<compile_context>
chip_gen: v5e
topology: v5e:2x2
jax: 0.10.0
libtpu: 0.0.40
codegen_flags: <defaults>
</compile_context>

<pallas_src>
import math

import jax
import jax.numpy as jnp
from jax.experimental import pallas as pl
from jax.experimental.pallas import tpu as pltpu


# -----------------------------------------------------------------------------
# Fast sine: Cody-Waite range reduction (mod pi) + degree-11 odd polynomial.
# Pure VPU ops (mul/fma/round/floor) — no transcendental-unit dependence.
# Valid for the bounded SIREN pre-activation range (|z| up to a few hundred).
# -----------------------------------------------------------------------------
_INV_PI = 0.3183098861837907       # 1/pi
_PI_HI = 3.140625                  # head of pi (exact in 12 bits)
_PI_LO = 9.676535897932384e-04     # pi - _PI_HI

# Taylor coefficients of sin(r)/r in r**2; max poly error ~6e-8 on [-pi/2, pi/2]
_S5 = -2.5052108385441718e-08
_S4 = 2.7557319223985893e-06
_S3 = -1.9841269841269841e-04
_S2 = 8.3333333333333332e-03
_S1 = -1.6666666666666666e-01


def _fast_sin(z):
    """sin(z) via z = n*pi + r, r in [-pi/2, pi/2], sin(z) = (-1)^n sin(r)."""
    n = jnp.round(z * _INV_PI)
    r = z - n * _PI_HI
    r = r - n * _PI_LO
    # (-1)^n without int conversion: frac(n/2) is 0.0 (even) or 0.5 (odd).
    half = n * 0.5
    sign = 1.0 - 4.0 * (half - jnp.floor(half))
    r2 = r * r
    p = _S5
    p = p * r2 + _S4
    p = p * r2 + _S3
    p = p * r2 + _S2
    p = p * r2 + _S1
    p = p * r2 + 1.0
    return sign * (r * p)


# -----------------------------------------------------------------------------
# Kernel
# -----------------------------------------------------------------------------
def _make_siren_kernel(num_linear, sine_flags, in_features, use_fast_sin):
    """Kernel args: (x_ref, w0, b0, ..., w_{L-1}, b_{L-1}, out_ref).

    x_ref: [in_features, tile_n]   (batch on lanes)
    w_l:   [out_l, in_l]           (torch layout, omega already folded in)
    b_l:   [out_l, 1]
    out:   [out_features, tile_n]
    """
    sin_fn = _fast_sin if use_fast_sin else jnp.sin

    def kernel(x_ref, *refs):
        out_ref = refs[-1]
        h = x_ref[...].astype(jnp.float32)                 # [in, tile_n]
        for l in range(num_linear):
            w = refs[2 * l][...].astype(jnp.float32)       # [out_l, in_l]
            b = refs[2 * l + 1][...].astype(jnp.float32)   # [out_l, 1]
            if l == 0 and in_features <= 4:
                # K is tiny: broadcast FMAs on the VPU beat a degenerate MXU dot.
                z = w[:, 0:1] * h[0:1, :]
                for k in range(1, in_features):
                    z = z + w[:, k:k + 1] * h[k:k + 1, :]
                z = z + b
            else:
                z = jnp.dot(w, h, preferred_element_type=jnp.float32) + b
            h = sin_fn(z) if sine_flags[l] else z
        out_ref[...] = h.astype(out_ref.dtype)

    return kernel


# -----------------------------------------------------------------------------
# Parameter init (mirrors the PyTorch module's init, deterministic via PRNGKey)
# -----------------------------------------------------------------------------
def init_siren_params(key, in_features, hidden_features, hidden_layers,
                      out_features, outermost_linear=False,
                      first_omega_0=30.0, hidden_omega_0=30.0):
    dims = ([in_features] + [hidden_features] * (hidden_layers + 1)
            + [out_features])
    params, omegas, sine_flags = [], [], []
    for l in range(len(dims) - 1):
        fan_in, fan_out = dims[l], dims[l + 1]
        key, kw, kb = jax.random.split(key, 3)
        if l == 0:
            bound_w = 1.0 / fan_in
            omega = first_omega_0
        else:
            bound_w = math.sqrt(6.0 / fan_in) / hidden_omega_0
            omega = hidden_omega_0
        # weight stored in torch layout: [out, in]
        w = jax.random.uniform(kw, (fan_out, fan_in), jnp.float32,
                               minval=-bound_w, maxval=bound_w)
        # nn.Linear default bias init: U(-1/sqrt(fan_in), 1/sqrt(fan_in))
        bound_b = 1.0 / math.sqrt(fan_in)
        b = jax.random.uniform(kb, (fan_out,), jnp.float32,
                               minval=-bound_b, maxval=bound_b)
        params.append((w, b))
        is_last = (l == len(dims) - 2)
        sine = not (is_last and outermost_linear)
        sine_flags.append(sine)
        omegas.append(omega)
    return params, tuple(omegas), tuple(sine_flags)


# -----------------------------------------------------------------------------
# Wrapper
# -----------------------------------------------------------------------------
def _pick_tile(n, tile_n):
    """Lane-aligned batch tile; keep >=4 grid steps when N allows (v7x 2 TCs)."""
    tile_n = max(128, (int(tile_n) // 128) * 128)
    while tile_n > 128 and -(-n // tile_n) < 4:
        tile_n = max(128, ((tile_n // 2) // 128) * 128)
    return tile_n


def siren_forward(coords, params, omegas, sine_flags, *, tile_n=8192,
                  feature_major=False, use_fast_sin=True):
    """SIREN forward.

    coords: [N, in_features] float32 (torch layout), or [in_features, N] when
            feature_major=True — the latter skips one extra HBM transpose pass
            before the kernel if the producer can stage coords feature-major.
    tile_n: batch tile (multiple of 128). Sweep 4096..16384 for very large N;
            it is auto-shrunk for small N to keep the grid balanced.
    """
    if feature_major:
        in_features, N = coords.shape
        coords_fm = coords
    else:
        N, in_features = coords.shape
        coords_fm = coords.T        # one extra HBM pass; avoidable upstream
    out_features = params[-1][0].shape[0]
    num_linear = len(params)

    # Fold omega into W and b of every sine layer (exact algebra, constant
    # fold at wrapper time); non-sine (outermost linear) layers keep scale 1.
    folded = []
    for (w, b), omega, sine in zip(params, omegas, sine_flags):
        scale = jnp.float32(omega if sine else 1.0)
        folded.append((w * scale, (b * scale).reshape(-1, 1)))

    tile_n = _pick_tile(N, tile_n)
    grid_len = -(-N // tile_n)
    if grid_len > 1 and grid_len % 2:
        grid_len += 1               # even step count: balanced across v7x's 2 TCs
    n_pad = grid_len * tile_n
    if n_pad != N:
        coords_fm = jnp.pad(coords_fm, ((0, 0), (0, n_pad - N)))

    kernel = _make_siren_kernel(num_linear, sine_flags, in_features,
                                use_fast_sin)

    in_specs = [pl.BlockSpec((in_features, tile_n), lambda i: (0, i))]
    flat_params = []
    for (w, b) in folded:
        # Grid-invariant resident blocks (same block index every step => no
        # re-DMA). Params total <10 KiB so the default double buffer is fine.
        in_specs.append(pl.BlockSpec(w.shape, lambda i: (0, 0)))
        in_specs.append(pl.BlockSpec(b.shape, lambda i: (0, 0)))
        flat_params.extend([w, b])

    out_spec = pl.BlockSpec((out_features, tile_n), lambda i: (0, i))

    # Advisory cost estimate: lets XLA schedule the surrounding
    # transpose/pad/slice around a compute-heavy custom call.
    macs = sum(int(w.shape[0] * w.shape[1]) for (w, _b) in params)
    n_sines = sum(int(w.shape[0])
                  for (w, _b), s in zip(params, sine_flags) if s)
    sine_flops = 18 if use_fast_sin else 0
    cost = pl.CostEstimate(
        flops=(2 * macs + sine_flops * n_sines) * N,
        transcendentals=(0 if use_fast_sin else n_sines) * N,
        bytes_accessed=4 * (in_features + out_features) * N,
    )

    fn = pl.pallas_call(
        kernel,
        out_shape=jax.ShapeDtypeStruct((out_features, n_pad), jnp.float32),
        grid_spec=pltpu.PrefetchScalarGridSpec(
            num_scalar_prefetch=0,
            grid=(grid_len,),
            in_specs=in_specs,
            out_specs=out_spec,
        ),
        compiler_params=pltpu.CompilerParams(
            dimension_semantics=("parallel",)),
        cost_estimate=cost,
    )
    out_t = fn(coords_fm, *flat_params)                    # [out_features, n_pad]
    return out_t[:, :N].T                                  # [N, out_features]


# -----------------------------------------------------------------------------
# Pure-JAX reference with the original (un-folded) semantics
# -----------------------------------------------------------------------------
def siren_ref(coords, params, omegas, sine_flags):
    h = coords
    for (w, b), omega, sine in zip(params, omegas, sine_flags):
        z = jnp.dot(h, w.T, precision=jax.lax.Precision.HIGHEST) + b
        h = jnp.sin(omega * z) if sine else z
    return h


if __name__ == "__main__":
    # Module-consistent small shapes:
    #   in_features=2, hidden_features=32, hidden_layers=2, out_features=1
    #   N coordinate rows (SIREN consumes flattened coord rows).
    key = jax.random.PRNGKey(0)
    k_params, k_x = jax.random.split(key)

    in_features, hidden_features, hidden_layers, out_features = 2, 32, 2, 1
    params, omegas, sine_flags = init_siren_params(
        k_params, in_features, hidden_features, hidden_layers, out_features,
        outermost_linear=False, first_omega_0=30.0, hidden_omega_0=30.0)

    N = 1000  # non-multiple of the tile: exercises the pad-and-slice path
    coords = jax.random.uniform(k_x, (N, in_features), jnp.float32,
                                minval=-1.0, maxval=1.0)

    # Sanity: polynomial sine vs jnp.sin over the post-fold argument range.
    zz = jnp.linspace(-80.0, 80.0, 8192)
    sin_err = float(jnp.max(jnp.abs(_fast_sin(zz) - jnp.sin(zz))))
    assert sin_err < 5e-6, f"fast-sin error too large: {sin_err}"

    # Default tile_n=8192 auto-shrinks to 256 here (grid of 4 even steps, so
    # v7x's two TensorCores both get work); for large point clouds sweep
    # tile_n in 4096..16384.
    out = siren_forward(coords, params, omegas, sine_flags)
    out = jax.block_until_ready(out)

    ref = siren_ref(coords, params, omegas, sine_flags)
    assert out.shape == (N, out_features)
    err = float(jnp.max(jnp.abs(out - ref)))
    # Tolerance covers f32 MXU accumulation + the ~2e-7 polynomial-sine error
    # propagated through the 4 layers; values are O(1) (outputs of sin).
    assert err < 5e-4, f"mismatch vs reference: max abs err {err}"

    print("KERNEL_OK")
</pallas_src>

<mosaic_0001>
module attributes {stable_mosaic.version = 11 : i64} {
  func.func @kernel(%arg0: i32, %arg1: memref<2x256xf32, #tpu.memory_space<vmem>>, %arg2: memref<32x2xf32, #tpu.memory_space<vmem>>, %arg3: memref<32x1xf32, #tpu.memory_space<vmem>>, %arg4: memref<32x32xf32, #tpu.memory_space<vmem>>, %arg5: memref<32x1xf32, #tpu.memory_space<vmem>>, %arg6: memref<32x32xf32, #tpu.memory_space<vmem>>, %arg7: memref<32x1xf32, #tpu.memory_space<vmem>>, %arg8: memref<1x32xf32, #tpu.memory_space<vmem>>, %arg9: memref<1x1xf32, #tpu.memory_space<vmem>>, %arg10: memref<1x256xf32, #tpu.memory_space<vmem>>) attributes {dimension_semantics = [#tpu.dimension_semantics<parallel>], iteration_bounds = array<i64: 4>, scalar_prefetch = 0 : i64, scratch_operands = 0 : i64, tpu.core_type = #tpu.core_type<tc>, window_params = [{transform_indices = @transform_0, window_bounds = array<i64: 2, 256>}, {pipeline_mode = #tpu.pipeline_mode<synchronous>, transform_indices = @transform_1, window_bounds = array<i64: 32, 2>}, {pipeline_mode = #tpu.pipeline_mode<synchronous>, transform_indices = @transform_2, window_bounds = array<i64: 32, 1>}, {pipeline_mode = #tpu.pipeline_mode<synchronous>, transform_indices = @transform_3, window_bounds = array<i64: 32, 32>}, {pipeline_mode = #tpu.pipeline_mode<synchronous>, transform_indices = @transform_4, window_bounds = array<i64: 32, 1>}, {pipeline_mode = #tpu.pipeline_mode<synchronous>, transform_indices = @transform_5, window_bounds = array<i64: 32, 32>}, {pipeline_mode = #tpu.pipeline_mode<synchronous>, transform_indices = @transform_6, window_bounds = array<i64: 32, 1>}, {pipeline_mode = #tpu.pipeline_mode<synchronous>, transform_indices = @transform_7, window_bounds = array<i64: 1, 32>}, {pipeline_mode = #tpu.pipeline_mode<synchronous>, transform_indices = @transform_8, window_bounds = array<i64: 1, 1>}, {transform_indices = @transform_9, window_bounds = array<i64: 1, 256>}]} {
    %c0 = arith.constant 0 : index
    %c0_0 = arith.constant 0 : index
    %0 = vector.load %arg1[%c0, %c0_0] : memref<2x256xf32, #tpu.memory_space<vmem>>, vector<2x256xf32>
    %c0_1 = arith.constant 0 : index
    %c0_2 = arith.constant 0 : index
    %1 = vector.load %arg2[%c0_1, %c0_2] : memref<32x2xf32, #tpu.memory_space<vmem>>, vector<32x2xf32>
    %c0_3 = arith.constant 0 : index
    %c0_4 = arith.constant 0 : index
    %2 = vector.load %arg3[%c0_3, %c0_4] : memref<32x1xf32, #tpu.memory_space<vmem>>, vector<32x1xf32>
    %3 = vector.extract_strided_slice %1 {offsets = [0, 0], sizes = [32, 1], strides = [1, 1]} : vector<32x2xf32> to vector<32x1xf32>
    %4 = vector.extract_strided_slice %0 {offsets = [0, 0], sizes = [1, 256], strides = [1, 1]} : vector<2x256xf32> to vector<1x256xf32>
    %5 = vector.broadcast %3 : vector<32x1xf32> to vector<32x256xf32>
    %6 = vector.broadcast %4 : vector<1x256xf32> to vector<32x256xf32>
    %7 = arith.mulf %5, %6 : vector<32x256xf32>
    %8 = vector.extract_strided_slice %1 {offsets = [0, 1], sizes = [32, 1], strides = [1, 1]} : vector<32x2xf32> to vector<32x1xf32>
    %9 = vector.extract_strided_slice %0 {offsets = [1, 0], sizes = [1, 256], strides = [1, 1]} : vector<2x256xf32> to vector<1x256xf32>
    %10 = vector.broadcast %8 : vector<32x1xf32> to vector<32x256xf32>
    %11 = vector.broadcast %9 : vector<1x256xf32> to vector<32x256xf32>
    %12 = arith.mulf %10, %11 : vector<32x256xf32>
    %13 = arith.addf %7, %12 : vector<32x256xf32>
    %14 = vector.broadcast %2 : vector<32x1xf32> to vector<32x256xf32>
    %15 = arith.addf %13, %14 : vector<32x256xf32>
    %cst = arith.constant 0.318309873 : f32
    %16 = vector.broadcast %cst : f32 to vector<32x256xf32>
    %17 = arith.mulf %15, %16 : vector<32x256xf32>
    %18 = math.roundeven %17 : vector<32x256xf32>
    %cst_5 = arith.constant 3.140625 : f32
    %19 = vector.broadcast %cst_5 : f32 to vector<32x256xf32>
    %20 = arith.mulf %18, %19 : vector<32x256xf32>
    %21 = arith.subf %15, %20 : vector<32x256xf32>
    %cst_6 = arith.constant 9.67653584E-4 : f32
    %22 = vector.broadcast %cst_6 : f32 to vector<32x256xf32>
    %23 = arith.mulf %18, %22 : vector<32x256xf32>
    %24 = arith.subf %21, %23 : vector<32x256xf32>
    %cst_7 = arith.constant 5.000000e-01 : f32
    %25 = vector.broadcast %cst_7 : f32 to vector<32x256xf32>
    %26 = arith.mulf %18, %25 : vector<32x256xf32>
    %27 = math.floor %26 : vector<32x256xf32>
    %28 = arith.subf %26, %27 : vector<32x256xf32>
    %cst_8 = arith.constant 4.000000e+00 : f32
    %29 = vector.broadcast %cst_8 : f32 to vector<32x256xf32>
    %30 = arith.mulf %29, %28 : vector<32x256xf32>
    %cst_9 = arith.constant 1.000000e+00 : f32
    %31 = vector.broadcast %cst_9 : f32 to vector<32x256xf32>
    %32 = arith.subf %31, %30 : vector<32x256xf32>
    %33 = arith.mulf %24, %24 : vector<32x256xf32>
    %cst_10 = arith.constant -2.50521079E-8 : f32
    %34 = vector.broadcast %cst_10 : f32 to vector<32x256xf32>
    %35 = arith.mulf %34, %33 : vector<32x256xf32>
    %cst_11 = arith.constant 2.75573188E-6 : f32
    %36 = vector.broadcast %cst_11 : f32 to vector<32x256xf32>
    %37 = arith.addf %35, %36 : vector<32x256xf32>
    %38 = arith.mulf %37, %33 : vector<32x256xf32>
    %cst_12 = arith.constant -1.98412701E-4 : f32
    %39 = vector.broadcast %cst_12 : f32 to vector<32x256xf32>
    %40 = arith.addf %38, %39 : vector<32x256xf32>
    %41 = arith.mulf %40, %33 : vector<32x256xf32>
    %cst_13 = arith.constant 0.00833333377 : f32
    %42 = vector.broadcast %cst_13 : f32 to vector<32x256xf32>
    %43 = arith.addf %41, %42 : vector<32x256xf32>
    %44 = arith.mulf %43, %33 : vector<32x256xf32>
    %cst_14 = arith.constant -0.166666672 : f32
    %45 = vector.broadcast %cst_14 : f32 to vector<32x256xf32>
    %46 = arith.addf %44, %45 : vector<32x256xf32>
    %47 = arith.mulf %46, %33 : vector<32x256xf32>
    %cst_15 = arith.constant 1.000000e+00 : f32
    %48 = vector.broadcast %cst_15 : f32 to vector<32x256xf32>
    %49 = arith.addf %47, %48 : vector<32x256xf32>
    %50 = arith.mulf %24, %49 : vector<32x256xf32>
    %51 = arith.mulf %32, %50 : vector<32x256xf32>
    %c0_16 = arith.constant 0 : index
    %c0_17 = arith.constant 0 : index
    %52 = vector.load %arg4[%c0_16, %c0_17] : memref<32x32xf32, #tpu.memory_space<vmem>>, vector<32x32xf32>
    %c0_18 = arith.constant 0 : index
    %c0_19 = arith.constant 0 : index
    %53 = vector.load %arg5[%c0_18, %c0_19] : memref<32x1xf32, #tpu.memory_space<vmem>>, vector<32x1xf32>
    %cst_20 = arith.constant dense<0.000000e+00> : vector<32x256xf32>
    %54 = tpu.matmul %52, %51, %cst_20 {dimension_numbers = #tpu.dot_dimension_numbers<[1], [0], [0], [1], [0, 0, 1, 1], [], []>} : vector<32x32xf32>, vector<32x256xf32>, vector<32x256xf32> -> vector<32x256xf32>
    %55 = vector.broadcast %53 : vector<32x1xf32> to vector<32x256xf32>
    %56 = arith.addf %54, %55 : vector<32x256xf32>
    %cst_21 = arith.constant 0.318309873 : f32
    %57 = vector.broadcast %cst_21 : f32 to vector<32x256xf32>
    %58 = arith.mulf %56, %57 : vector<32x256xf32>
    %59 = math.roundeven %58 : vector<32x256xf32>
    %cst_22 = arith.constant 3.140625 : f32
    %60 = vector.broadcast %cst_22 : f32 to vector<32x256xf32>
    %61 = arith.mulf %59, %60 : vector<32x256xf32>
    %62 = arith.subf %56, %61 : vector<32x256xf32>
    %cst_23 = arith.constant 9.67653584E-4 : f32
    %63 = vector.broadcast %cst_23 : f32 to vector<32x256xf32>
    %64 = arith.mulf %59, %63 : vector<32x256xf32>
    %65 = arith.subf %62, %64 : vector<32x256xf32>
    %cst_24 = arith.constant 5.000000e-01 : f32
    %66 = vector.broadcast %cst_24 : f32 to vector<32x256xf32>
    %67 = arith.mulf %59, %66 : vector<32x256xf32>
    %68 = math.floor %67 : vector<32x256xf32>
    %69 = arith.subf %67, %68 : vector<32x256xf32>
    %cst_25 = arith.constant 4.000000e+00 : f32
    %70 = vector.broadcast %cst_25 : f32 to vector<32x256xf32>
    %71 = arith.mulf %70, %69 : vector<32x256xf32>
    %cst_26 = arith.constant 1.000000e+00 : f32
    %72 = vector.broadcast %cst_26 : f32 to vector<32x256xf32>
    %73 = arith.subf %72, %71 : vector<32x256xf32>
    %74 = arith.mulf %65, %65 : vector<32x256xf32>
    %cst_27 = arith.constant -2.50521079E-8 : f32
    %75 = vector.broadcast %cst_27 : f32 to vector<32x256xf32>
    %76 = arith.mulf %75, %74 : vector<32x256xf32>
    %cst_28 = arith.constant 2.75573188E-6 : f32
    %77 = vector.broadcast %cst_28 : f32 to vector<32x256xf32>
    %78 = arith.addf %76, %77 : vector<32x256xf32>
    %79 = arith.mulf %78, %74 : vector<32x256xf32>
    %cst_29 = arith.constant -1.98412701E-4 : f32
    %80 = vector.broadcast %cst_29 : f32 to vector<32x256xf32>
    %81 = arith.addf %79, %80 : vector<32x256xf32>
    %82 = arith.mulf %81, %74 : vector<32x256xf32>
    %cst_30 = arith.constant 0.00833333377 : f32
    %83 = vector.broadcast %cst_30 : f32 to vector<32x256xf32>
    %84 = arith.addf %82, %83 : vector<32x256xf32>
    %85 = arith.mulf %84, %74 : vector<32x256xf32>
    %cst_31 = arith.constant -0.166666672 : f32
    %86 = vector.broadcast %cst_31 : f32 to vector<32x256xf32>
    %87 = arith.addf %85, %86 : vector<32x256xf32>
    %88 = arith.mulf %87, %74 : vector<32x256xf32>
    %cst_32 = arith.constant 1.000000e+00 : f32
    %89 = vector.broadcast %cst_32 : f32 to vector<32x256xf32>
    %90 = arith.addf %88, %89 : vector<32x256xf32>
    %91 = arith.mulf %65, %90 : vector<32x256xf32>
    %92 = arith.mulf %73, %91 : vector<32x256xf32>
    %c0_33 = arith.constant 0 : index
    %c0_34 = arith.constant 0 : index
    %93 = vector.load %arg6[%c0_33, %c0_34] : memref<32x32xf32, #tpu.memory_space<vmem>>, vector<32x32xf32>
    %c0_35 = arith.constant 0 : index
    %c0_36 = arith.constant 0 : index
    %94 = vector.load %arg7[%c0_35, %c0_36] : memref<32x1xf32, #tpu.memory_space<vmem>>, vector<32x1xf32>
    %cst_37 = arith.constant dense<0.000000e+00> : vector<32x256xf32>
    %95 = tpu.matmul %93, %92, %cst_37 {dimension_numbers = #tpu.dot_dimension_numbers<[1], [0], [0], [1], [0, 0, 1, 1], [], []>} : vector<32x32xf32>, vector<32x256xf32>, vector<32x256xf32> -> vector<32x256xf32>
    %96 = vector.broadcast %94 : vector<32x1xf32> to vector<32x256xf32>
    %97 = arith.addf %95, %96 : vector<32x256xf32>
    %cst_38 = arith.constant 0.318309873 : f32
    %98 = vector.broadcast %cst_38 : f32 to vector<32x256xf32>
    %99 = arith.mulf %97, %98 : vector<32x256xf32>
    %100 = math.roundeven %99 : vector<32x256xf32>
    %cst_39 = arith.constant 3.140625 : f32
    %101 = vector.broadcast %cst_39 : f32 to vector<32x256xf32>
    %102 = arith.mulf %100, %101 : vector<32x256xf32>
    %103 = arith.subf %97, %102 : vector<32x256xf32>
    %cst_40 = arith.constant 9.67653584E-4 : f32
    %104 = vector.broadcast %cst_40 : f32 to vector<32x256xf32>
    %105 = arith.mulf %100, %104 : vector<32x256xf32>
    %106 = arith.subf %103, %105 : vector<32x256xf32>
    %cst_41 = arith.constant 5.000000e-01 : f32
    %107 = vector.broadcast %cst_41 : f32 to vector<32x256xf32>
    %108 = arith.mulf %100, %107 : vector<32x256xf32>
    %109 = math.floor %108 : vector<32x256xf32>
    %110 = arith.subf %108, %109 : vector<32x256xf32>
    %cst_42 = arith.constant 4.000000e+00 : f32
    %111 = vector.broadcast %cst_42 : f32 to vector<32x256xf32>
    %112 = arith.mulf %111, %110 : vector<32x256xf32>
    %cst_43 = arith.constant 1.000000e+00 : f32
    %113 = vector.broadcast %cst_43 : f32 to vector<32x256xf32>
    %114 = arith.subf %113, %112 : vector<32x256xf32>
    %115 = arith.mulf %106, %106 : vector<32x256xf32>
    %cst_44 = arith.constant -2.50521079E-8 : f32
    %116 = vector.broadcast %cst_44 : f32 to vector<32x256xf32>
    %117 = arith.mulf %116, %115 : vector<32x256xf32>
    %cst_45 = arith.constant 2.75573188E-6 : f32
    %118 = vector.broadcast %cst_45 : f32 to vector<32x256xf32>
    %119 = arith.addf %117, %118 : vector<32x256xf32>
    %120 = arith.mulf %119, %115 : vector<32x256xf32>
    %cst_46 = arith.constant -1.98412701E-4 : f32
    %121 = vector.broadcast %cst_46 : f32 to vector<32x256xf32>
    %122 = arith.addf %120, %121 : vector<32x256xf32>
    %123 = arith.mulf %122, %115 : vector<32x256xf32>
    %cst_47 = arith.constant 0.00833333377 : f32
    %124 = vector.broadcast %cst_47 : f32 to vector<32x256xf32>
    %125 = arith.addf %123, %124 : vector<32x256xf32>
    %126 = arith.mulf %125, %115 : vector<32x256xf32>
    %cst_48 = arith.constant -0.166666672 : f32
    %127 = vector.broadcast %cst_48 : f32 to vector<32x256xf32>
    %128 = arith.addf %126, %127 : vector<32x256xf32>
    %129 = arith.mulf %128, %115 : vector<32x256xf32>
    %cst_49 = arith.constant 1.000000e+00 : f32
    %130 = vector.broadcast %cst_49 : f32 to vector<32x256xf32>
    %131 = arith.addf %129, %130 : vector<32x256xf32>
    %132 = arith.mulf %106, %131 : vector<32x256xf32>
    %133 = arith.mulf %114, %132 : vector<32x256xf32>
    %c0_50 = arith.constant 0 : index
    %c0_51 = arith.constant 0 : index
    %134 = vector.load %arg8[%c0_50, %c0_51] : memref<1x32xf32, #tpu.memory_space<vmem>>, vector<1x32xf32>
    %c0_52 = arith.constant 0 : index
    %c0_53 = arith.constant 0 : index
    %135 = vector.load %arg9[%c0_52, %c0_53] : memref<1x1xf32, #tpu.memory_space<vmem>>, vector<1x1xf32>
    %cst_54 = arith.constant dense<0.000000e+00> : vector<1x256xf32>
    %136 = tpu.matmul %134, %133, %cst_54 {dimension_numbers = #tpu.dot_dimension_numbers<[1], [0], [0], [1], [0, 0, 1, 1], [], []>} : vector<1x32xf32>, vector<32x256xf32>, vector<1x256xf32> -> vector<1x256xf32>
    %137 = vector.broadcast %135 : vector<1x1xf32> to vector<1x256xf32>
    %138 = arith.addf %136, %137 : vector<1x256xf32>
    %cst_55 = arith.constant 0.318309873 : f32
    %139 = vector.broadcast %cst_55 : f32 to vector<1x256xf32>
    %140 = arith.mulf %138, %139 : vector<1x256xf32>
    %141 = math.roundeven %140 : vector<1x256xf32>
    %cst_56 = arith.constant 3.140625 : f32
    %142 = vector.broadcast %cst_56 : f32 to vector<1x256xf32>
    %143 = arith.mulf %141, %142 : vector<1x256xf32>
    %144 = arith.subf %138, %143 : vector<1x256xf32>
    %cst_57 = arith.constant 9.67653584E-4 : f32
    %145 = vector.broadcast %cst_57 : f32 to vector<1x256xf32>
    %146 = arith.mulf %141, %145 : vector<1x256xf32>
    %147 = arith.subf %144, %146 : vector<1x256xf32>
    %cst_58 = arith.constant 5.000000e-01 : f32
    %148 = vector.broadcast %cst_58 : f32 to vector<1x256xf32>
    %149 = arith.mulf %141, %148 : vector<1x256xf32>
    %150 = math.floor %149 : vector<1x256xf32>
    %151 = arith.subf %149, %150 : vector<1x256xf32>
    %cst_59 = arith.constant 4.000000e+00 : f32
    %152 = vector.broadcast %cst_59 : f32 to vector<1x256xf32>
    %153 = arith.mulf %152, %151 : vector<1x256xf32>
    %cst_60 = arith.constant 1.000000e+00 : f32
    %154 = vector.broadcast %cst_60 : f32 to vector<1x256xf32>
    %155 = arith.subf %154, %153 : vector<1x256xf32>
    %156 = arith.mulf %147, %147 : vector<1x256xf32>
    %cst_61 = arith.constant -2.50521079E-8 : f32
    %157 = vector.broadcast %cst_61 : f32 to vector<1x256xf32>
    %158 = arith.mulf %157, %156 : vector<1x256xf32>
    %cst_62 = arith.constant 2.75573188E-6 : f32
    %159 = vector.broadcast %cst_62 : f32 to vector<1x256xf32>
    %160 = arith.addf %158, %159 : vector<1x256xf32>
    %161 = arith.mulf %160, %156 : vector<1x256xf32>
    %cst_63 = arith.constant -1.98412701E-4 : f32
    %162 = vector.broadcast %cst_63 : f32 to vector<1x256xf32>
    %163 = arith.addf %161, %162 : vector<1x256xf32>
    %164 = arith.mulf %163, %156 : vector<1x256xf32>
    %cst_64 = arith.constant 0.00833333377 : f32
    %165 = vector.broadcast %cst_64 : f32 to vector<1x256xf32>
    %166 = arith.addf %164, %165 : vector<1x256xf32>
    %167 = arith.mulf %166, %156 : vector<1x256xf32>
    %cst_65 = arith.constant -0.166666672 : f32
    %168 = vector.broadcast %cst_65 : f32 to vector<1x256xf32>
    %169 = arith.addf %167, %168 : vector<1x256xf32>
    %170 = arith.mulf %169, %156 : vector<1x256xf32>
    %cst_66 = arith.constant 1.000000e+00 : f32
    %171 = vector.broadcast %cst_66 : f32 to vector<1x256xf32>
    %172 = arith.addf %170, %171 : vector<1x256xf32>
    %173 = arith.mulf %147, %172 : vector<1x256xf32>
    %174 = arith.mulf %155, %173 : vector<1x256xf32>
    %c0_67 = arith.constant 0 : index
    %c0_68 = arith.constant 0 : index
    %175 = vector.load %arg10[%c0_67, %c0_68] : memref<1x256xf32, #tpu.memory_space<vmem>>, vector<1x256xf32>
    tpu.vector_store %arg10[%c0_67, %c0_68], %174 {strides = array<i32>} : memref<1x256xf32, #tpu.memory_space<vmem>>, vector<1x256xf32>,
    return
  }
  func.func @transform_0(%arg0: i32) -> (i32, i32) {
    %c0_i32 = arith.constant 0 : i32
    %c0_i32_0 = arith.constant 0 : i32
    return %c0_i32, %arg0 : i32, i32
  }
  func.func @transform_1(%arg0: i32) -> (i32, i32) {
    %c0_i32 = arith.constant 0 : i32
    %c0_i32_0 = arith.constant 0 : i32
    %c0_i32_1 = arith.constant 0 : i32
    return %c0_i32, %c0_i32_0 : i32, i32
  }
  func.func @transform_2(%arg0: i32) -> (i32, i32) {
    %c0_i32 = arith.constant 0 : i32
    %c0_i32_0 = arith.constant 0 : i32
    %c0_i32_1 = arith.constant 0 : i32
    return %c0_i32, %c0_i32_0 : i32, i32
  }
  func.func @transform_3(%arg0: i32) -> (i32, i32) {
    %c0_i32 = arith.constant 0 : i32
    %c0_i32_0 = arith.constant 0 : i32
    %c0_i32_1 = arith.constant 0 : i32
    return %c0_i32, %c0_i32_0 : i32, i32
  }
  func.func @transform_4(%arg0: i32) -> (i32, i32) {
    %c0_i32 = arith.constant 0 : i32
    %c0_i32_0 = arith.constant 0 : i32
    %c0_i32_1 = arith.constant 0 : i32
    return %c0_i32, %c0_i32_0 : i32, i32
  }
  func.func @transform_5(%arg0: i32) -> (i32, i32) {
    %c0_i32 = arith.constant 0 : i32
    %c0_i32_0 = arith.constant 0 : i32
    %c0_i32_1 = arith.constant 0 : i32
    return %c0_i32, %c0_i32_0 : i32, i32
  }
  func.func @transform_6(%arg0: i32) -> (i32, i32) {
    %c0_i32 = arith.constant 0 : i32
    %c0_i32_0 = arith.constant 0 : i32
    %c0_i32_1 = arith.constant 0 : i32
    return %c0_i32, %c0_i32_0 : i32, i32
  }
  func.func @transform_7(%arg0: i32) -> (i32, i32) {
    %c0_i32 = arith.constant 0 : i32
    %c0_i32_0 = arith.constant 0 : i32
    %c0_i32_1 = arith.constant 0 : i32
    return %c0_i32, %c0_i32_0 : i32, i32
  }
  func.func @transform_8(%arg0: i32) -> (i32, i32) {
    %c0_i32 = arith.constant 0 : i32
    %c0_i32_0 = arith.constant 0 : i32
    %c0_i32_1 = arith.constant 0 : i32
    return %c0_i32, %c0_i32_0 : i32, i32
  }
  func.func @transform_9(%arg0: i32) -> (i32, i32) {
    %c0_i32 = arith.constant 0 : i32
    %c0_i32_0 = arith.constant 0 : i32
    return %c0_i32, %arg0 : i32, i32
  }
}

</mosaic_0001>

<bundles_post_ra>
// kernel: tpu_custom_call.1
= control target key start
LH: loop header
LB: loop body
LE: loop exit
PB: predicated region body
PF: predicated region fallthrough
CT: control target
= control target key end

     0   :  { %s2463_s0 = inlined_call_operand.vmem [shape: f32[2,1024], index: 0, kind: input, shape index: {}]   ;;  %s2464_s1 = inlined_call_operand.vmem [shape: f32[32,2], index: 1, kind: input, shape index: {}]   ;;  %s2465_s2 = inlined_call_operand.vmem [shape: f32[32,1], index: 2, kind: input, shape index: {}]   ;;  %s2466_s3 = inlined_call_operand.vmem [shape: f32[32,32], index: 3, kind: input, shape index: {}]   ;;  %s2467_s4 = inlined_call_operand.vmem [shape: f32[32,1], index: 4, kind: input, shape index: {}]   ;;  %s2468_s5 = inlined_call_operand.vmem [shape: f32[32,32], index: 5, kind: input, shape index: {}]   ;;  %s2469_s6 = inlined_call_operand.vmem [shape: f32[32,1], index: 6, kind: input, shape index: {}]   ;;  %s2470_s7 = inlined_call_operand.vmem [shape: f32[1,32], index: 7, kind: input, shape index: {}]   ;;  %s2471_s8 = inlined_call_operand.<no memory space> [shape: f32[1,1], index: 8, kind: input, shape index: {}]   ;;  %s2472_s9 = inlined_call_operand.hbm [shape: f32[1,1024], index: 9, kind: output, shape index: {}]  }
   0x1   :  { %v14_v0 = vstv %s2471_s8 }
   0x2   :  { %15 = vst [vmem:[#allocation2] sm:$0x1] %v14_v0 }
   0x3   :  { %16 = vsyncpa [#allocation4], 0 }
   0x4   :  { %18 = vsyncpa [#allocation4 + $0x1], 0  ;;  %s1810_s11 = smov 0   ;;  %s1812_s12 = smov 0  }
   0x5   :  { %s1814_s13 = smov 0   ;;  %s1816_s14 = smov 0  }
   0x6 LB: > { %s1403_s8 = sadd.s32 4294967295, %s1753_s14   ;;  %s1404_s15 = sadd.s32 4294967294, %s1753_s14   ;;  %s1753_s14 = sphi %s1816_s14, %s2478_s14   ;;  %s1749_s13 = sphi %s1814_s13, %s2477_s13   ;;  %s1745_s12 = sphi %s1812_s12, %s2476_s12   ;;  %s1741_s11 = sphi %s1810_s11, %s2475_s11  }
   0x7   : > { %s1833_s16 = sadd.s32 1, %s1753_s14   ;;  %s225_s17 = sadd.s32 1, %s1749_s13 }
   0x8   : > { %s222_s18 = ssub.s32 %s1753_s14, %s1833_s16  ;;  %p235_p0 = scmp.ne.s32.totalorder %s1749_s13, %s1745_s12 }
   0x9   : > { %p223_p1 = scmp.eq.s32.totalorder %s222_s18, 0  ;;  %p236_p2 = scmp.eq.s32.totalorder %s1403_s8, 3 }
   0xa   : > { %p241_p3 = scmp.ne.s32.totalorder %s1745_s12, %s1741_s11  ;;  %p242_p4 = scmp.eq.s32.totalorder %s1404_s15, 3 }
   0xb   : > { %s1845_s19 = scalar_select %p223_p1, %s1749_s13, %s225_s17  }
   0xc   : > { %p1847_p5 = por %p236_p2, %p235_p0  ;;  %p1851_p6 = por %p242_p4, %p241_p3 }
   0xd   : > { %p1407_p7 = scmp.ge.s32.totalorder %s1753_s14, 1  ;;  %p293_p8 = scmp.lt.s32.totalorder %s1753_s14, 5 }
   0xf   : > { %p294_p9 = pnand %p1407_p7, %p293_p8 }
  0x10   : > { %s1907_s28 = sshll.u32 (!%p294_p9), %s1403_s8, 1  ;;  %s326_s25 = sand.u32 (!%p294_p9), 1, %s1745_s12  }
  0x11   : > { %297 = sbr.rel (%p294_p9) target bundleno = 821 (0x335), region = 56  ;;  %p330_p10 = scmp.lt.s32.totalorder (!%p294_p9), %s1907_s28, 7 }
  0x12   : > { %s1408_s26 = sshll.u32 (!%p294_p9), %s326_s25, 1  ;;  %s1330_s8 = scalar_lea.sflag (!%p294_p9), [#allocation4], %s326_s25 }
  0x13   : > { %s328_s10 = scalar_lea.vmem (!%p294_p9), [#allocation3], %s1408_s26  ;;  %s1711_s24 = scalar_lea.hbm (!%p294_p9), %s2472_s9, 8 }
  0x14   : > { %s1342_s15 = sshll.u32 (!%p294_p9), %s328_s10, 4  ;;  %s1343_s15 = int_to_ptr.vmem [resolvable:$true] %s1342_s15 }
  0x16   : > { %v340_v1 = vld [vmem:[%s2464_s1 + $0x18] sm:$0xff]  ;;  %v339_v2 = vld [vmem:[%s2464_s1 + $0x10] sm:$0xff]  ;;  %v338_v3 = vld [vmem:[%s2464_s1 + $0x8] sm:$0xff]  ;;  %v1755_v4 = vmov 0   ;;  %v1756_v5 = vmov 1   ;;  %s331_s29 = scalar_select %p330_p10, %s1907_s28, 7 }
  0x17   : > { %1686 = vset.pattern.permute.xlu2 %v1755_v4  ;;  %1684 = vset.pattern.permute.xlu1 %v1755_v4  ;;  %v337_v6 = vld [vmem:[%s2464_s1] sm:$0xff]  ;;  %v344_v7 = vld [vmem:[%s2465_s2 + $0x18] sm:$0xff]  ;;  %v343_v8 = vld [vmem:[%s2465_s2 + $0x10] sm:$0xff]  ;;  %vm666_vm8 = vcmask 261120  }
  0x18   : > { %1682 = vset.pattern.permute.xlu0 %v1755_v4  ;;  %357 = vperm.xlu1 %1684, %v339_v2   ;;  %v341_v9 = vld [vmem:[%s2465_s2] sm:$0xff]  ;;  %v342_v10 = vld [vmem:[%s2465_s2 + $0x8] sm:$0xff]  ;;  %v645_v11 = vld [vmem:[%s2467_s4 + $0x18] sm:$0xff]  ;;  %s1410_s30 = sshll.u32 %s331_s29, 1 }
  0x19   : > { %362 = vperm.xlu0 %1682, %v340_v1   ;;  %352 = vperm.xlu2 %1686, %v338_v3   ;;  %v936_v12 = vld [vmem:[%s2469_s6 + $0x18] sm:$0xff]  ;;  %v644_v13 = vld [vmem:[%s2467_s4 + $0x10] sm:$0xff]  ;;  %v643_v14 = vld [vmem:[%s2467_s4 + $0x8] sm:$0xff]  ;;  %s333_s17 = scalar_lea.vmem %s2463_s0, %s1410_s30  ;;  %s1340_s30 = scalar_lea.hbm %s2472_s9, %s1907_s28 }
  0x1a   : > { %v933_v15 = vld [vmem:[%s2469_s6] sm:$0xff]  ;;  %v935_v17 = vld [vmem:[%s2469_s6 + $0x10] sm:$0xff]  ;;  %v934_v18 = vld [vmem:[%s2469_s6 + $0x8] sm:$0xff] }
  0x1b   : > { %v642_v16 = vld [vmem:[%s2467_s4] sm:$0xff] }
  0x1c   : > { %v1220_v19 = vld [vmem:[#allocation2] sm:$0x1] }
  0x1d   : > { %v336_v21 = vld [vmem:[%s333_s17] sm:$0xf]  ;;  %s1344_s17 = sshll.u32 %s1340_s30, 4  ;;  %s1345_s17 = int_to_ptr.hbm [resolvable:$true] %s1344_s17 }
  0x1e   : > { %v366_v23 = vperm.slane %v336_v21, 0  ;;  %v367_v24 = vperm.slane %v336_v21, 2  ;;  %v396_v25 = vperm.slane %v336_v21, 1  ;;  %v397_v26 = vperm.slane %v336_v21, 3  ;;  %s1705_s28 = sshra.s32 %s1345_s17, 4  ;;  %s1706_s28 = int_to_ptr.hbm [resolvable:$true] %s1705_s28 }
  0x1f   : > { %s1707_s18 = scalar_lea.hbm %s1706_s28, 2  ;;  %p1712_p0 = scmp.lt.s32.totalorder %s1706_s28, %s2472_s9 }
  0x20   : > { %1685 = vset.pattern.permute.xlu1 %v1756_v5  ;;  %v370_v27 = vperm.slane %v366_v23, 0  ;;  %v371_v28 = vperm.slane %v367_v24, 0  ;;  %v400_v29 = vperm.slane %v396_v25, 1  ;;  %v401_v30 = vperm.slane %v397_v26, 1  ;;  %p1708_p11 = scmp.ne.s32.totalorder %s1706_s28, %s1707_s18  ;;  %p1713_p1 = scmp.lt.s32.totalorder %s1711_s24, %s1707_s18 }
  0x21   : > { %1683 = vset.pattern.permute.xlu0 %v1756_v5  ;;  %1687 = vset.pattern.permute.xlu2 %v1756_v5 }
  0x22   : > { %393 = vperm.xlu0 %1683, %v340_v1   ;;  %389 = vperm.xlu1 %1685, %v339_v2   ;;  %p1709_p12 = pnand %p1708_p11, %p1847_p5  ;;  %p1714_p2 = por %p1713_p1, %p1712_p0 }
  0x23   : > { %385 = vperm.xlu2 %1687, %v338_v3  }
  0x24   : > { %p1710_p13 = pneg %p1709_p12 }
  0x26   : > { %p1715_p3 = pnand %p1714_p2, %p1710_p13 }
  0x2a   : > { %1688 = vset.pattern.permute.xlu1 %v1755_v4  ;;  %381 = vperm.xlu0 %1683, %v337_v6  }
  0x2b   : > { %1689 = vset.pattern.permute.xlu2 %v1755_v4  ;;  %435 = vperm.xlu1 %1688, %v344_v7  }
  0x2c   : > { %347 = vperm.xlu2 %1689, %v337_v6  }
  0x32   : > { %1690 = vset.pattern.permute.xlu0 %v1755_v4 }
  0x33   : > { %430 = vperm.xlu1 %1688, %v343_v8   ;;  %420 = vperm.xlu0 %1690, %v341_v9  }
  0x34   : > { %425 = vperm.xlu2 %1689, %v342_v10  }
  0x3b   : > { %663 = vperm.xlu1 %1688, %v645_v11   ;;  %954 = vperm.xlu0 %1690, %v936_v12  }
  0x3c   : > { %658 = vperm.xlu2 %1689, %v644_v13  }
  0x43   : > { %653 = vperm.xlu1 %1688, %v643_v14   ;;  %939 = vperm.xlu0 %1690, %v933_v15  }
  0x44   : > { %648 = vperm.xlu2 %1689, %v642_v16  }
  0x4b   : > { %949 = vperm.xlu1 %1688, %v935_v17  }
  0x4c   : > { %944 = vperm.xlu2 %1689, %v934_v18  }
  0x53   : > { %1223 = vperm.xlu1 %1688, %v1220_v19  }
  0x73   : > { %v353_v20 = vpop.permute.xlu2 %352 }
  0x74   : > { %v374_v32 = vmul.f32 %v370_v27, %v353_v20  ;;  %v375_v33 = vmul.f32 %v371_v28, %v353_v20 }
  0x7d   : > { %v386_v22 = vpop.permute.xlu2 %385 }
  0x7e   : > { %v404_v34 = vmul.f32 %v400_v29, %v386_v22  ;;  %v405_v35 = vmul.f32 %v401_v30, %v386_v22 }
  0x80   : > { %v412_v38 = vadd.f32 %v404_v34, %v374_v32  ;;  %v413_v39 = vadd.f32 %v405_v35, %v375_v33 }
  0x86   : > { %v348_v31 = vpop.permute.xlu2 %347 }
  0x87   : > { %v372_v3 = vmul.f32 %v370_v27, %v348_v31  ;;  %v373_v4 = vmul.f32 %v371_v28, %v348_v31 }
  0x8a   : > { %v358_v36 = vpop.permute.xlu1 %357 }
  0x8b   : > { %v363_v37 = vpop.permute.xlu0 %362  ;;  %v376_v5 = vmul.f32 %v370_v27, %v358_v36  ;;  %v377_v18 = vmul.f32 %v371_v28, %v358_v36 }
  0x8c   : > { %v378_v57 = vmul.f32 %v370_v27, %v363_v37  ;;  %v379_v58 = vmul.f32 %v371_v28, %v363_v37 }
  0x8e   : > { %v426_v40 = vpop.permute.xlu2 %425 }
  0x8f   : > { %v440_v41 = vadd.f32 %v426_v40, %v412_v38  ;;  %v1914_v42 = vadd.f32 %v426_v40, %v413_v39 }
  0x91   : > { %v448_v43 = vmul.f32 0.31830987, %v440_v41  ;;  %v449_v44 = vmul.f32 0.31830987, %v1914_v42 }
  0x93   : > { %v1451_v45 = vcvt.f32.s32 %v448_v43  ;;  %v1449_v46 = vand.u32 2147483647, %v448_v43  ;;  %v1459_v47 = vcvt.f32.s32 %v449_v44  ;;  %v1454_v51 = vand.u32 2147483648, %v448_v43 }
  0x94   : > { %v394_v48 = vpop.permute.xlu0 %393  ;;  %v390_v49 = vpop.permute.xlu1 %389  ;;  %v1457_v60 = vand.u32 2147483647, %v449_v44  ;;  %v1462_v62 = vand.u32 2147483648, %v449_v44 }
  0x95   : > { %v1452_v50 = vcvt.s32.f32 %v1451_v45  ;;  %v1460_v53 = vcvt.s32.f32 %v1459_v47  ;;  %vm1450_vm0 = vcmp.lt.f32.partialorder %v1449_v46, 8388608.0  ;;  %v408_v54 = vmul.f32 %v400_v29, %v394_v48 }
  0x96   : > { %v409_v55 = vmul.f32 %v401_v30, %v394_v48  ;;  %v406_v8 = vmul.f32 %v400_v29, %v390_v49  ;;  %vm1458_vm1 = vcmp.lt.f32.partialorder %v1457_v60, 8388608.0  ;;  %v407_v12 = vmul.f32 %v401_v30, %v390_v49 }
  0x97   : > { %v1453_v52 = vand.u32 2147483647, %v1452_v50  ;;  %v1461_v61 = vand.u32 2147483647, %v1460_v53  ;;  %v416_v1 = vadd.f32 %v408_v54, %v378_v57 }
  0x98   : > { %v417_v2 = vadd.f32 %v409_v55, %v379_v58  ;;  %v414_v21 = vadd.f32 %v406_v8, %v376_v5  ;;  %v415_v24 = vadd.f32 %v407_v12, %v377_v18 }
  0x99   : > { %v1455_v56 = vor.u32 %v1454_v51, %v1453_v52  ;;  %v1463_v11 = vor.u32 %v1462_v62, %v1461_v61 }
  0x9b   : > { %v1456_v59 = vsel %vm1450_vm0, %v1455_v56, %v448_v43  ;;  %v1464_v22 = vsel %vm1458_vm1, %v1463_v11, %v449_v44 }
  0x9c   : > { %v464_v63 = vmul.f32 3.140625, %v1456_v59  ;;  %v382_v0 = vpop.permute.xlu0 %381  ;;  %v480_v13 = vmul.f32 0.0009676536, %v1456_v59  ;;  %v1925_v25 = vmul.f32 0.5, %v1456_v59  ;;  %v1937_v40 = vmul.f32 3.140625, %v1464_v22 }
  0x9d   : > { %v436_v6 = vpop.permute.xlu1 %435  ;;  %v402_v14 = vmul.f32 %v400_v29, %v382_v0  ;;  %v403_v15 = vmul.f32 %v401_v30, %v382_v0  ;;  %v481_v48 = vmul.f32 0.0009676536, %v1464_v22 }
  0x9e   : > { %v472_v7 = vsub.f32 %v440_v41, %v464_v63  ;;  %v1917_v9 = vadd.f32 %v436_v6, %v416_v1  ;;  %v1919_v10 = vadd.f32 %v436_v6, %v417_v2  ;;  %v473_v59 = vsub.f32 %v1914_v42, %v1937_v40 }
  0x9f   : > { %v410_v31 = vadd.f32 %v402_v14, %v372_v3  ;;  %v411_v32 = vadd.f32 %v403_v15, %v373_v4  ;;  %v504_v62 = vfloor.f32 %v1925_v25  ;;  %v497_v2 = vmul.f32 0.5, %v1464_v22 }
  0xa0   : > { %v452_v16 = vmul.f32 0.31830987, %v1917_v9  ;;  %v453_v17 = vmul.f32 0.31830987, %v1919_v10  ;;  %v1923_v19 = vsub.f32 %v472_v7, %v480_v13 }
  0xa2   : > { %v1483_v20 = vcvt.f32.s32 %v452_v16  ;;  %v1491_v23 = vcvt.f32.s32 %v453_v17  ;;  %v1481_v26 = vand.u32 2147483647, %v452_v16  ;;  %v1486_v29 = vand.u32 2147483648, %v452_v16 }
  0xa3   : > { %v1489_v30 = vand.u32 2147483647, %v453_v17  ;;  %v1929_v28 = vmul.f32 %v1923_v19, %v1923_v19  ;;  %v1494_v43 = vand.u32 2147483648, %v453_v17 }
  0xa4   : > { %v1484_v27 = vcvt.s32.f32 %v1483_v20  ;;  %v1492_v33 = vcvt.s32.f32 %v1491_v23  ;;  %vm1482_vm2 = vcmp.lt.f32.partialorder %v1481_v26, 8388608.0 }
  0xa5   : > { %v431_v34 = vpop.permute.xlu1 %430  ;;  %v421_v35 = vpop.permute.xlu0 %420  ;;  %vm1490_vm3 = vcmp.lt.f32.partialorder %v1489_v30, 8388608.0  ;;  %v544_v50 = vmul.f32 -2.5052108e-08, %v1929_v28 }
  0xa6   : > { %v1485_v36 = vand.u32 2147483647, %v1484_v27  ;;  %v1931_v37 = vadd.f32 %v431_v34, %v414_v21  ;;  %v1933_v38 = vadd.f32 %v431_v34, %v415_v24  ;;  %v1935_v39 = vadd.f32 %v421_v35, %v410_v31 }
  0xa7   : > { %v1493_v41 = vand.u32 2147483647, %v1492_v33  ;;  %v1939_v44 = vadd.f32 %v421_v35, %v411_v32  ;;  %v552_v1 = vadd.f32 2.7557319e-06, %v544_v50  ;;  %v1967_v34 = vsub.f32 %v1925_v25, %v504_v62 }
  0xa8   : > { %v1487_v45 = vor.u32 %v1486_v29, %v1485_v36  ;;  %v450_v46 = vmul.f32 0.31830987, %v1931_v37  ;;  %v451_v47 = vmul.f32 0.31830987, %v1933_v38  ;;  %v446_v53 = vmul.f32 0.31830987, %v1935_v39 }
  0xa9   : > { %v1495_v49 = vor.u32 %v1494_v43, %v1493_v41  ;;  %v1946_v54 = vmul.f32 0.31830987, %v1939_v44  ;;  %v505_v41 = vfloor.f32 %v497_v2 }
  0xaa   : > { %v1488_v51 = vsel %vm1482_vm2, %v1487_v45, %v452_v16  ;;  %v1467_v52 = vcvt.f32.s32 %v450_v46  ;;  %v1465_v57 = vand.u32 2147483647, %v450_v46  ;;  %v1475_v58 = vcvt.f32.s32 %v451_v47 }
  0xab   : > { %v1496_v55 = vsel %vm1490_vm3, %v1495_v49, %v453_v17  ;;  %v468_v56 = vmul.f32 3.140625, %v1488_v51  ;;  %v1473_v63 = vand.u32 2147483647, %v451_v47  ;;  %v1470_v5 = vand.u32 2147483648, %v450_v46 }
  0xac   : > { %v469_v60 = vmul.f32 3.140625, %v1496_v55  ;;  %v1468_v61 = vcvt.s32.f32 %v1467_v52  ;;  %v1476_v0 = vcvt.s32.f32 %v1475_v58  ;;  %v1435_v6 = vcvt.f32.s32 %v446_v53 }
  0xad   : > { %v476_v3 = vsub.f32 %v1917_v9, %v468_v56  ;;  %vm1466_vm4 = vcmp.lt.f32.partialorder %v1465_v57, 8388608.0  ;;  %v1478_v8 = vand.u32 2147483648, %v451_v47  ;;  %v1443_v11 = vcvt.f32.s32 %v1946_v54 }
  0xae   : > { %v1469_v4 = vand.u32 2147483647, %v1468_v61  ;;  %v1477_v7 = vand.u32 2147483647, %v1476_v0  ;;  %v477_v42 = vsub.f32 %v1919_v10, %v469_v60  ;;  %v1436_v13 = vcvt.s32.f32 %v1435_v6 }
  0xaf   : > { %v484_v14 = vmul.f32 0.0009676536, %v1488_v51  ;;  %vm1474_vm5 = vcmp.lt.f32.partialorder %v1473_v63, 8388608.0  ;;  %v1444_v16 = vcvt.s32.f32 %v1443_v11  ;;  %v500_v17 = vmul.f32 0.5, %v1488_v51 }
  0xb0   : > { %v1471_v12 = vor.u32 %v1470_v5, %v1469_v4  ;;  %v1479_v15 = vor.u32 %v1478_v8, %v1477_v7  ;;  %v1437_v20 = vand.u32 2147483647, %v1436_v13  ;;  %v485_v21 = vmul.f32 0.0009676536, %v1496_v55 }
  0xb1   : > { %v1954_v9 = vsub.f32 %v476_v3, %v484_v14  ;;  %v1438_v24 = vand.u32 2147483648, %v446_v53  ;;  %v1445_v26 = vand.u32 2147483647, %v1444_v16  ;;  %v1433_v27 = vand.u32 2147483647, %v446_v53 }
  0xb2   : > { %v1472_v18 = vsel %vm1466_vm4, %v1471_v12, %v450_v46  ;;  %v1956_v22 = vsel %vm1474_vm5, %v1479_v15, %v451_v47  ;;  %v508_v31 = vfloor.f32 %v500_v17  ;;  %v1962_v32 = vsub.f32 %v477_v42, %v485_v21 }
  0xb3   : > { %v466_v23 = vmul.f32 3.140625, %v1472_v18  ;;  %v1960_v10 = vmul.f32 %v1954_v9, %v1954_v9  ;;  %v467_v29 = vmul.f32 3.140625, %v1956_v22  ;;  %v1439_v30 = vor.u32 %v1438_v24, %v1437_v20 }
  0xb4   : > { %v1446_v33 = vand.u32 2147483648, %v1946_v54  ;;  %v1441_v35 = vand.u32 2147483647, %v1946_v54  ;;  %v1973_v40 = vmul.f32 %v1962_v32, %v1962_v32  ;;  %v560_v46 = vmul.f32 %v552_v1, %v1929_v28 }
  0xb5   : > { %v548_v36 = vmul.f32 -2.5052108e-08, %v1960_v10  ;;  %v474_v43 = vsub.f32 %v1931_v37, %v466_v23  ;;  %v1977_v47 = vsub.f32 %v473_v59, %v481_v48  ;;  %vm1434_vm6 = vcmp.lt.f32.partialorder %v1433_v27, 8388608.0 }
  0xb6   : > { %v1447_v45 = vor.u32 %v1446_v33, %v1445_v26  ;;  %v516_v49 = vsub.f32 %v500_v17, %v508_v31  ;;  %v549_v50 = vmul.f32 -2.5052108e-08, %v1973_v40  ;;  %v475_v51 = vsub.f32 %v1933_v38, %v467_v29 }
  0xb7   : > { %v556_v25 = vadd.f32 2.7557319e-06, %v548_v36  ;;  %v1981_v52 = vsel %vm1434_vm6, %v1439_v30, %v446_v53  ;;  %v501_v56 = vmul.f32 0.5, %v1496_v55  ;;  %v482_v57 = vmul.f32 0.0009676536, %v1472_v18 }
  0xb8   : > { %vm1442_vm7 = vcmp.lt.f32.partialorder %v1441_v35, 8388608.0  ;;  %v557_v37 = vadd.f32 2.7557319e-06, %v549_v50  ;;  %v1984_v60 = vsub.f32 %v497_v2, %v505_v41  ;;  %v483_v61 = vmul.f32 0.0009676536, %v1956_v22 }
  0xb9   : > { %v564_v58 = vmul.f32 %v556_v25, %v1960_v10  ;;  %v1987_v48 = vsel %vm1442_vm7, %v1447_v45, %v1946_v54  ;;  %v1989_v59 = vsub.f32 %v474_v43, %v482_v57  ;;  %v1994_v38 = vmul.f32 %v1977_v47, %v1977_v47 }
  0xba   : > { %v462_v53 = vmul.f32 3.140625, %v1981_v52  ;;  %v565_v62 = vmul.f32 %v557_v37, %v1973_v40  ;;  %v568_v63 = vadd.f32 -0.0001984127, %v560_v46  ;;  %v524_v0 = vmul.f32 4.0, %v516_v49 }
  0xbb   : > { %v572_v55 = vadd.f32 -0.0001984127, %v564_v58  ;;  %v509_v1 = vfloor.f32 %v501_v56  ;;  %v2000_v54 = vmul.f32 %v1989_v59, %v1989_v59  ;;  %v2002_v2 = vsub.f32 %v475_v51, %v483_v61 }
  0xbc   : > { %v2005_v3 = vmul.f32 3.140625, %v1987_v48  ;;  %v573_v5 = vadd.f32 -0.0001984127, %v565_v62  ;;  %v576_v6 = vmul.f32 %v568_v63, %v1929_v28  ;;  %v498_v7 = vmul.f32 0.5, %v1472_v18 }
  0xbd   : > { %v580_v4 = vmul.f32 %v572_v55, %v1960_v10  ;;  %v546_v8 = vmul.f32 -2.5052108e-08, %v2000_v54  ;;  %v2012_v11 = vmul.f32 %v2002_v2, %v2002_v2  ;;  %v545_v42 = vmul.f32 -2.5052108e-08, %v1994_v38 }
  0xbe   : > { %v470_v12 = vsub.f32 %v1935_v39, %v462_v53  ;;  %v581_v14 = vmul.f32 %v573_v5, %v1973_v40  ;;  %v584_v15 = vadd.f32 0.008333334, %v576_v6  ;;  %v532_v16 = vsub.f32 1.0, %v524_v0 }
  0xbf   : > { %v588_v13 = vadd.f32 0.008333334, %v580_v4  ;;  %v517_v17 = vsub.f32 %v501_v56, %v509_v1  ;;  %v554_v20 = vadd.f32 2.7557319e-06, %v546_v8  ;;  %v547_v21 = vmul.f32 -2.5052108e-08, %v2012_v11 }
  0xc0   : > { %v589_v23 = vadd.f32 0.008333334, %v581_v14  ;;  %v592_v24 = vmul.f32 %v584_v15, %v1929_v28  ;;  %v553_v26 = vadd.f32 2.7557319e-06, %v545_v42  ;;  %v506_v27 = vfloor.f32 %v498_v7 }
  0xc1   : > { %v596_v18 = vmul.f32 %v588_v13, %v1960_v10  ;;  %v562_v31 = vmul.f32 %v554_v20, %v2000_v54  ;;  %v555_v29 = vadd.f32 2.7557319e-06, %v547_v21  ;;  %v478_v39 = vmul.f32 0.0009676536, %v1981_v52 }
  0xc2   : > { %v597_v33 = vmul.f32 %v589_v23, %v1973_v40  ;;  %v499_v35 = vmul.f32 0.5, %v1956_v22  ;;  %v561_v36 = vmul.f32 %v553_v26, %v1994_v38  ;;  %v525_v41 = vmul.f32 4.0, %v517_v17 }
  0xc3   : > { %v604_v30 = vadd.f32 -0.16666667, %v596_v18  ;;  %v570_v43 = vadd.f32 -0.0001984127, %v562_v31  ;;  %v563_v45 = vmul.f32 %v555_v29, %v2012_v11  ;;  %v2026_v46 = vsub.f32 %v470_v12, %v478_v39 }
  0xc4   : > { %v471_v49 = vsub.f32 %v1939_v44, %v2005_v3  ;;  %v605_v50 = vadd.f32 -0.16666667, %v597_v33  ;;  %v600_v51 = vadd.f32 -0.16666667, %v592_v24  ;;  %v514_v56 = vsub.f32 %v498_v7, %v506_v27 }
  0xc5   : > { %v612_v25 = vmul.f32 %v604_v30, %v1960_v10  ;;  %v578_v57 = vmul.f32 %v570_v43, %v2000_v54  ;;  %v571_v58 = vadd.f32 -0.0001984127, %v563_v45  ;;  %v569_v22 = vadd.f32 -0.0001984127, %v561_v36 }
  0xc6   : > { %v613_v61 = vmul.f32 %v605_v50, %v1973_v40  ;;  %v507_v53 = vfloor.f32 %v499_v35  ;;  %v2035_v55 = vmul.f32 %v2026_v46, %v2026_v46  ;;  %v533_v62 = vsub.f32 1.0, %v525_v41 }
  0xc7   : > { %v620_v37 = vadd.f32 1.0, %v612_v25  ;;  %v586_v63 = vadd.f32 0.008333334, %v578_v57  ;;  %v579_v44 = vmul.f32 %v571_v58, %v2012_v11  ;;  %v577_v10 = vmul.f32 %v569_v22, %v1994_v38 }
  0xc8   : > { %v621_v1 = vadd.f32 1.0, %v613_v61  ;;  %v608_v3 = vmul.f32 %v600_v51, %v1929_v28  ;;  %v542_v4 = vmul.f32 -2.5052108e-08, %v2035_v55  ;;  %v522_v5 = vmul.f32 4.0, %v514_v56 }
  0xc9   : > { %v628_v0 = vmul.f32 %v620_v37, %v1954_v9  ;;  %v594_v40 = vmul.f32 %v586_v63, %v2000_v54  ;;  %v587_v6 = vadd.f32 0.008333334, %v579_v44  ;;  %v585_v7 = vadd.f32 0.008333334, %v577_v10 }
  0xca   : > { %v629_v42 = vmul.f32 %v621_v1, %v1962_v32  ;;  %v515_v12 = vsub.f32 %v499_v35, %v507_v53  ;;  %v550_v13 = vadd.f32 2.7557319e-06, %v542_v4  ;;  %v479_v17 = vmul.f32 0.0009676536, %v1987_v48 }
  0xcb   : > { %v636_v8 = vmul.f32 %v628_v0, %v532_v16  ;;  %v602_v14 = vadd.f32 -0.16666667, %v594_v40  ;;  %v595_v15 = vmul.f32 %v587_v6, %v2012_v11  ;;  %v593_v9 = vmul.f32 %v585_v7, %v1994_v38  ;;  %v638_v6 = vld [vmem:[%s2466_s3] sm:$0xff] }
  0xcc   : > { %v637_v28 = vmul.f32 %v629_v42, %v533_v62  ;;  %v616_v20 = vadd.f32 1.0, %v608_v3  ;;  %v494_v21 = vmul.f32 0.5, %v1981_v52  ;;  %v558_v18 = vmul.f32 %v550_v13, %v2035_v55 }
  0xcd   : > { %691 = vmatpush.msra.mxu0 %v636_v8  ;;  %v610_v16 = vmul.f32 %v602_v14, %v2000_v54  ;;  %v603_v23 = vadd.f32 -0.16666667, %v595_v15  ;;  %v601_v32 = vadd.f32 -0.16666667, %v593_v9  ;;  %v487_v24 = vsub.f32 %v471_v49, %v479_v17  ;;  %v640_v15 = vld [vmem:[%s2466_s3 + $0x10] sm:$0xff]  ;;  %v641_v9 = vld [vmem:[%s2466_s3 + $0x18] sm:$0xff]  ;;  %v659_v17 = vpop.permute.xlu2 %658 }
  0xce   : > { %720 = vmatpush.msra.mxu1 %v637_v28  ;;  %v523_v26 = vmul.f32 4.0, %v515_v12  ;;  %v520_v27 = vmul.f32 4.0, %v1967_v34  ;;  %v521_v31 = vmul.f32 4.0, %v1984_v60  ;;  %v566_v29 = vadd.f32 -0.0001984127, %v558_v18  ;;  %v2083_v28 = vpop.permute.xlu1 %663 }
  0xcf   : > { %v618_v39 = vadd.f32 1.0, %v610_v16  ;;  %v611_v30 = vmul.f32 %v603_v23, %v2012_v11  ;;  %v609_v33 = vmul.f32 %v601_v32, %v1994_v38  ;;  %v535_v52 = vmul.f32 %v487_v24, %v487_v24 }
  0xd0   : > { %v530_v35 = vsub.f32 1.0, %v522_v5  ;;  %v624_v36 = vmul.f32 %v616_v20, %v1923_v19  ;;  %v502_v54 = vfloor.f32 %v494_v21  ;;  %v574_v41 = vmul.f32 %v566_v29, %v2035_v55 }
  0xd1   : > { %v626_v43 = vmul.f32 %v618_v39, %v1989_v59  ;;  %v619_v45 = vadd.f32 1.0, %v611_v30  ;;  %v617_v49 = vadd.f32 1.0, %v609_v33  ;;  %v543_v34 = vmul.f32 -2.5052108e-08, %v535_v52 }
  0xd2   : > { %v531_v25 = vsub.f32 1.0, %v523_v26  ;;  %v528_v60 = vsub.f32 1.0, %v520_v27  ;;  %v582_v50 = vadd.f32 0.008333334, %v574_v41  ;;  %v529_v57 = vsub.f32 1.0, %v521_v31 }
  0xd3   : > { %v634_v51 = vmul.f32 %v626_v43, %v530_v35  ;;  %v627_v11 = vmul.f32 %v619_v45, %v2002_v2  ;;  %v625_v38 = vmul.f32 %v617_v49, %v1977_v47  ;;  %v551_v56 = vadd.f32 2.7557319e-06, %v543_v34 }
  0xd4   : > { %v510_v58 = vsub.f32 %v494_v21, %v502_v54  ;;  %v590_v19 = vmul.f32 %v582_v50, %v2035_v55  ;;  %v632_v37 = vmul.f32 %v624_v36, %v528_v60  ;;  %v495_v59 = vmul.f32 0.5, %v1987_v48 }
  0xd5   : > { %692 = vmatpush.msra.mxu0 %v634_v51  ;;  %v635_v22 = vmul.f32 %v627_v11, %v531_v25  ;;  %v559_v61 = vmul.f32 %v551_v56, %v535_v52  ;;  %v633_v62 = vmul.f32 %v625_v38, %v529_v57  ;;  %v649_v20 = vpop.permute.xlu2 %648 }
  0xd6   : > { %v598_v53 = vadd.f32 -0.16666667, %v590_v19  ;;  %v518_v44 = vmul.f32 4.0, %v510_v58  ;;  %v503_v47 = vfloor.f32 %v495_v59  ;;  %v654_v32 = vpop.permute.xlu1 %653 }
  0xd7   : > { %721 = vmatpush.msra.mxu1 %v635_v22  ;;  %693 = vmatpush.msra.mxu0 %v632_v37  ;;  %v567_v63 = vadd.f32 -0.0001984127, %v559_v61 }
  0xd8   : > { %v606_v2 = vmul.f32 %v598_v53, %v2035_v55  ;;  %v526_v3 = vsub.f32 1.0, %v518_v44  ;;  %v511_v5 = vsub.f32 %v495_v59, %v503_v47 }
  0xd9   : > { %722 = vmatpush.msra.mxu1 %v633_v62  ;;  %v575_v10 = vmul.f32 %v567_v63, %v535_v52 }
  0xda   : > { %v614_v0 = vadd.f32 1.0, %v606_v2  ;;  %v519_v8 = vmul.f32 4.0, %v511_v5 }
  0xdb   : > { %v583_v1 = vadd.f32 0.008333334, %v575_v10 }
  0xdc   : > { %v622_v4 = vmul.f32 %v614_v0, %v2026_v46  ;;  %v527_v12 = vsub.f32 1.0, %v519_v8  ;;  %v639_v46 = vld [vmem:[%s2466_s3 + $0x8] sm:$0xff] }
  0xdd   : > { %v591_v40 = vmul.f32 %v583_v1, %v535_v52 }
  0xde   : > { %v630_v48 = vmul.f32 %v622_v4, %v526_v3 }
  0xdf   : > { %v599_v7 = vadd.f32 -0.16666667, %v591_v40 }
  0xe0   : > { %694 = vmatpush.msra.mxu0 %v630_v48 }
  0xe1   : > { %v607_v55 = vmul.f32 %v599_v7, %v535_v52  ;;  %1411 = vmatmul.msk.f32.vlgmr.msra.gmra.mxu0 %vm666_vm8, %v638_v6 }
  0xe3   : > { %v615_v42 = vadd.f32 1.0, %v607_v55 }
  0xe5   : > { %v623_v13 = vmul.f32 %v615_v42, %v487_v24 }
  0xe7   : > { %v631_v14 = vmul.f32 %v623_v13, %v527_v12 }
  0xe9   : > { %723 = vmatpush.msra.mxu1 %v631_v14  ;;  %1412 = vmatmul.msk.f32.gmra.mxu0 %vm666_vm8, %v639_v46 }
  0xea   : > { %1415 = vmatmul.msk.f32.vlgmr.msra.gmra.mxu1 %vm666_vm8, %v638_v6 }
  0xf1   : > { %1413 = vmatmul.msk.f32.gmra.mxu0 %vm666_vm8, %v640_v15 }
  0xf2   : > { %1416 = vmatmul.msk.f32.gmra.mxu1 %vm666_vm8, %v639_v46 }
  0xf9   : > { %1414 = vmatmul.msk.f32.gmra.mxu0 %vm666_vm8, %v641_v9 }
  0xfa   : > { %1417 = vmatmul.msk.f32.gmra.mxu1 %vm666_vm8, %v640_v15 }
 0x102   : > { %1418 = vmatmul.msk.f32.gmra.mxu1 %vm666_vm8, %v641_v9 }
 0x15e   : > { %v696_v21 = vpop.f32.mrf.mxu0 }
 0x15f   : > { %v2085_v18 = vadd.f32 %v696_v21, %v649_v20 }
 0x161   : > { %v737_v16 = vmul.f32 0.31830987, %v2085_v18 }
 0x163   : > { %v1499_v23 = vcvt.f32.s32 %v737_v16  ;;  %v1502_v43 = vand.u32 2147483648, %v737_v16  ;;  %v1497_v60 = vand.u32 2147483647, %v737_v16 }
 0x165   : > { %v1500_v29 = vcvt.s32.f32 %v1499_v23  ;;  %vm1498_vm10 = vcmp.lt.f32.partialorder %v1497_v60, 8388608.0 }
 0x166   : > { %v699_v24 = vpop.f32.mrf.mxu0 }
 0x167   : > { %v725_v26 = vpop.f32.mrf.mxu1  ;;  %v700_v27 = vadd.f32 %v699_v24, %v654_v32  ;;  %v1501_v52 = vand.u32 2147483647, %v1500_v29 }
 0x168   : > { %v2088_v31 = vadd.f32 %v725_v26, %v649_v20 }
 0x169   : > { %v739_v39 = vmul.f32 0.31830987, %v700_v27  ;;  %v1503_v51 = vor.u32 %v1502_v43, %v1501_v52 }
 0x16a   : > { %v738_v30 = vmul.f32 0.31830987, %v2088_v31 }
 0x16b   : > { %v1515_v33 = vcvt.f32.s32 %v739_v39  ;;  %v1513_v54 = vand.u32 2147483647, %v739_v39  ;;  %v1518_v49 = vand.u32 2147483648, %v739_v39  ;;  %v1504_v37 = vsel %vm1498_vm10, %v1503_v51, %v737_v16 }
 0x16c   : > { %v1507_v36 = vcvt.f32.s32 %v738_v30  ;;  %v1505_v59 = vand.u32 2147483647, %v738_v30  ;;  %v1510_v62 = vand.u32 2147483648, %v738_v30  ;;  %v753_v6 = vmul.f32 3.140625, %v1504_v37 }
 0x16d   : > { %v1516_v35 = vcvt.s32.f32 %v1515_v33  ;;  %vm1514_vm9 = vcmp.lt.f32.partialorder %v1513_v54, 8388608.0  ;;  %v769_v9 = vmul.f32 0.0009676536, %v1504_v37  ;;  %v785_v16 = vmul.f32 0.5, %v1504_v37 }
 0x16e   : > { %v702_v41 = vpop.f32.mrf.mxu0  ;;  %v1508_v56 = vcvt.s32.f32 %v1507_v36  ;;  %vm1506_vm12 = vcmp.lt.f32.partialorder %v1505_v59, 8388608.0 }
 0x16f   : > { %v1517_v45 = vand.u32 2147483647, %v1516_v35  ;;  %v728_v34 = vpop.f32.mrf.mxu1  ;;  %v2091_v25 = vadd.f32 %v702_v41, %v659_v17  ;;  %v793_v51 = vfloor.f32 %v785_v16 }
 0x170   : > { %v2093_v50 = vadd.f32 %v728_v34, %v654_v32  ;;  %v1509_v53 = vand.u32 2147483647, %v1508_v56 }
 0x171   : > { %v1519_v11 = vor.u32 %v1518_v49, %v1517_v45  ;;  %v741_v38 = vmul.f32 0.31830987, %v2091_v25 }
 0x172   : > { %v740_v57 = vmul.f32 0.31830987, %v2093_v50  ;;  %v1511_v42 = vor.u32 %v1510_v62, %v1509_v53 }
 0x173   : > { %v2097_v58 = vsel %vm1514_vm9, %v1519_v11, %v739_v39  ;;  %v1531_v19 = vcvt.f32.s32 %v741_v38  ;;  %v1529_v10 = vand.u32 2147483647, %v741_v38  ;;  %v1534_v0 = vand.u32 2147483648, %v741_v38 }
 0x174   : > { %v755_v22 = vmul.f32 3.140625, %v2097_v58  ;;  %v1523_v61 = vcvt.f32.s32 %v740_v57  ;;  %v771_v4 = vmul.f32 0.0009676536, %v2097_v58  ;;  %v1521_v5 = vand.u32 2147483647, %v740_v57 }
 0x175   : > { %v1532_v44 = vcvt.s32.f32 %v1531_v19  ;;  %v1526_v8 = vand.u32 2147483648, %v740_v57  ;;  %vm1530_vm11 = vcmp.lt.f32.partialorder %v1529_v10, 8388608.0  ;;  %v2111_v32 = vsel %vm1506_vm12, %v1511_v42, %v738_v30 }
 0x176   : > { %v763_v63 = vsub.f32 %v700_v27, %v755_v22  ;;  %v705_v2 = vpop.f32.mrf.mxu0  ;;  %v1524_v47 = vcvt.s32.f32 %v1523_v61  ;;  %vm1522_vm13 = vcmp.lt.f32.partialorder %v1521_v5, 8388608.0  ;;  %v754_v56 = vmul.f32 3.140625, %v2111_v32 }
 0x177   : > { %v731_v1 = vpop.f32.mrf.mxu1  ;;  %v2101_v3 = vadd.f32 %v705_v2, %v2083_v28  ;;  %v1533_v40 = vand.u32 2147483647, %v1532_v44  ;;  %v787_v61 = vmul.f32 0.5, %v2097_v58  ;;  %v801_v42 = vsub.f32 %v785_v16, %v793_v51 }
 0x178   : > { %v2104_v48 = vadd.f32 %v731_v1, %v659_v17  ;;  %v1525_v7 = vand.u32 2147483647, %v1524_v47  ;;  %v2107_v12 = vsub.f32 %v763_v63, %v771_v4  ;;  %v761_v17 = vsub.f32 %v2085_v18, %v753_v6 }
 0x179   : > { %v743_v55 = vmul.f32 0.31830987, %v2101_v3  ;;  %v1535_v13 = vor.u32 %v1534_v0, %v1533_v40 }
 0x17a   : > { %v742_v46 = vmul.f32 0.31830987, %v2104_v48  ;;  %v1527_v14 = vor.u32 %v1526_v8, %v1525_v7  ;;  %v2115_v24 = vmul.f32 %v2107_v12, %v2107_v12  ;;  %v2128_v11 = vsub.f32 %v761_v17, %v769_v9 }
 0x17b   : > { %v1547_v15 = vcvt.f32.s32 %v743_v55  ;;  %v1536_v20 = vsel %vm1530_vm11, %v1535_v13, %v741_v38  ;;  %v1545_v54 = vand.u32 2147483647, %v743_v55  ;;  %v1550_v49 = vand.u32 2147483648, %v743_v55 }
 0x17c   : > { %v1539_v21 = vcvt.f32.s32 %v742_v46  ;;  %v757_v23 = vmul.f32 3.140625, %v1536_v20  ;;  %v2117_v26 = vsel %vm1522_vm13, %v1527_v14, %v740_v57  ;;  %v773_v39 = vmul.f32 0.0009676536, %v1536_v20 }
 0x17d   : > { %v1537_v33 = vand.u32 2147483647, %v742_v46  ;;  %v1548_v52 = vcvt.s32.f32 %v1547_v15  ;;  %v1542_v18 = vand.u32 2147483648, %v742_v46  ;;  %v756_v30 = vmul.f32 3.140625, %v2117_v26 }
 0x17e   : > { %v1540_v27 = vcvt.s32.f32 %v1539_v21  ;;  %v765_v29 = vsub.f32 %v2091_v25, %v757_v23  ;;  %v835_v25 = vmul.f32 -2.5052108e-08, %v2115_v24  ;;  %vm1546_vm15 = vcmp.lt.f32.partialorder %v1545_v54, 8388608.0 }
 0x17f   : > { %v734_v35 = vpop.f32.mrf.mxu1  ;;  %v1549_v45 = vand.u32 2147483647, %v1548_v52  ;;  %vm1538_vm14 = vcmp.lt.f32.partialorder %v1537_v33, 8388608.0  ;;  %v764_v22 = vsub.f32 %v2093_v50, %v756_v30  ;;  %v772_v53 = vmul.f32 0.0009676536, %v2117_v26 }
 0x180   : > { %v1541_v36 = vand.u32 2147483647, %v1540_v27  ;;  %v2121_v41 = vadd.f32 %v734_v35, %v2083_v28  ;;  %v2124_v43 = vsub.f32 %v765_v29, %v773_v39  ;;  %v843_v44 = vadd.f32 2.7557319e-06, %v835_v25 }
 0x181   : > { %v1551_v28 = vor.u32 %v1550_v49, %v1549_v45  ;;  %v2145_v40 = vsub.f32 %v764_v22, %v772_v53  ;;  %v789_v6 = vmul.f32 0.5, %v1536_v20  ;;  %v2159_v14 = vmul.f32 %v2128_v11, %v2128_v11 }
 0x182   : > { %v1543_v34 = vor.u32 %v1542_v18, %v1541_v36  ;;  %v744_v60 = vmul.f32 0.31830987, %v2121_v41  ;;  %v2132_v38 = vmul.f32 %v2124_v43, %v2124_v43  ;;  %v762_v21 = vsub.f32 %v2088_v31, %v754_v56 }
 0x183   : > { %v1552_v59 = vsel %vm1546_vm15, %v1551_v28, %v743_v55  ;;  %v2168_v16 = vmul.f32 %v2145_v40, %v2145_v40  ;;  %v797_v23 = vfloor.f32 %v789_v6  ;;  %v770_v31 = vmul.f32 0.0009676536, %v2111_v32 }
 0x184   : > { %v2135_v57 = vsel %vm1538_vm14, %v1543_v34, %v742_v46  ;;  %v1555_v19 = vcvt.f32.s32 %v744_v60  ;;  %v759_v62 = vmul.f32 3.140625, %v1552_v59  ;;  %v1553_v10 = vand.u32 2147483647, %v744_v60 }
 0x185   : > { %v758_v37 = vmul.f32 3.140625, %v2135_v57  ;;  %v774_v47 = vmul.f32 0.0009676536, %v2135_v57  ;;  %v837_v0 = vmul.f32 -2.5052108e-08, %v2132_v38  ;;  %v1558_v4 = vand.u32 2147483648, %v744_v60 }
 0x186   : > { %v1556_v63 = vcvt.s32.f32 %v1555_v19  ;;  %v767_v1 = vsub.f32 %v2101_v3, %v759_v62  ;;  %v775_v5 = vmul.f32 0.0009676536, %v1552_v59  ;;  %vm1554_vm0 = vcmp.lt.f32.partialorder %v1553_v10, 8388608.0 }
 0x187   : > { %v766_v2 = vsub.f32 %v2104_v48, %v758_v37  ;;  %v845_v7 = vadd.f32 2.7557319e-06, %v837_v0  ;;  %v851_v48 = vmul.f32 %v843_v44, %v2115_v24  ;;  %v795_v46 = vfloor.f32 %v787_v61 }
 0x188   : > { %v1557_v50 = vand.u32 2147483647, %v1556_v63  ;;  %v2149_v55 = vsub.f32 %v767_v1, %v775_v5  ;;  %v791_v27 = vmul.f32 0.5, %v1552_v59  ;;  %v805_v34 = vsub.f32 %v789_v6, %v797_v23 }
 0x189   : > { %v2147_v58 = vsub.f32 %v766_v2, %v774_v47  ;;  %v853_v3 = vmul.f32 %v845_v7, %v2132_v38  ;;  %v859_v20 = vadd.f32 -0.0001984127, %v851_v48  ;;  %v803_v18 = vsub.f32 %v787_v61, %v795_v46 }
 0x18a   : > { %v1559_v8 = vor.u32 %v1558_v4, %v1557_v50  ;;  %v2163_v9 = vmul.f32 %v2149_v55, %v2149_v55  ;;  %v2178_v25 = vmul.f32 4.0, %v801_v42  ;;  %v799_v51 = vfloor.f32 %v791_v27 }
 0x18b   : > { %v2154_v13 = vmul.f32 %v2147_v58, %v2147_v58  ;;  %v861_v39 = vadd.f32 -0.0001984127, %v853_v3  ;;  %v867_v33 = vmul.f32 %v859_v20, %v2115_v24  ;;  %v836_v56 = vmul.f32 -2.5052108e-08, %v2168_v16 }
 0x18c   : > { %v1560_v15 = vsel %vm1554_vm0, %v1559_v8, %v744_v60  ;;  %v839_v29 = vmul.f32 -2.5052108e-08, %v2163_v9  ;;  %v2182_v19 = vsub.f32 %v762_v21, %v770_v31  ;;  %v2189_v59 = vmul.f32 4.0, %v803_v18 }
 0x18d   : > { %v760_v17 = vmul.f32 3.140625, %v1560_v15  ;;  %v776_v35 = vmul.f32 0.0009676536, %v1560_v15  ;;  %v838_v36 = vmul.f32 -2.5052108e-08, %v2154_v13  ;;  %v869_v30 = vmul.f32 %v861_v39, %v2132_v38 }
 0x18e   : > { %v847_v54 = vadd.f32 2.7557319e-06, %v839_v29  ;;  %v875_v45 = vadd.f32 0.008333334, %v867_v33  ;;  %v844_v63 = vadd.f32 2.7557319e-06, %v836_v56  ;;  %v807_v0 = vsub.f32 %v791_v27, %v799_v51 }
 0x18f   : > { %v768_v52 = vsub.f32 %v2121_v41, %v760_v17  ;;  %v846_v60 = vadd.f32 2.7557319e-06, %v838_v36  ;;  %v877_v41 = vadd.f32 0.008333334, %v869_v30  ;;  %v2194_v2 = vmul.f32 4.0, %v805_v34 }
 0x190   : > { %v855_v28 = vmul.f32 %v847_v54, %v2163_v9  ;;  %v883_v62 = vmul.f32 %v875_v45, %v2115_v24  ;;  %v790_v47 = vmul.f32 0.5, %v2135_v57  ;;  %v852_v4 = vmul.f32 %v844_v63, %v2168_v16 }
 0x191   : > { %v2176_v49 = vsub.f32 %v768_v52, %v776_v35  ;;  %v854_v37 = vmul.f32 %v846_v60, %v2154_v13  ;;  %v885_v53 = vmul.f32 %v877_v41, %v2132_v38  ;;  %v792_v5 = vmul.f32 0.5, %v1560_v15 }
 0x192   : > { %v863_v61 = vadd.f32 -0.0001984127, %v855_v28  ;;  %v833_v8 = vmul.f32 -2.5052108e-08, %v2159_v14  ;;  %v2203_v48 = vmul.f32 %v2182_v19, %v2182_v19  ;;  %v891_v3 = vadd.f32 -0.16666667, %v883_v62 }
 0x193   : > { %v2186_v22 = vmul.f32 %v2176_v49, %v2176_v49  ;;  %v862_v10 = vadd.f32 -0.0001984127, %v854_v37  ;;  %v893_v50 = vadd.f32 -0.16666667, %v885_v53  ;;  %v860_v57 = vadd.f32 -0.0001984127, %v852_v4 }
 0x194   : > { %v871_v1 = vmul.f32 %v863_v61, %v2163_v9  ;;  %v821_v20 = vsub.f32 1.0, %v2194_v2  ;;  %v841_v17 = vadd.f32 2.7557319e-06, %v833_v8  ;;  %v815_v23 = vmul.f32 4.0, %v807_v0 }
 0x195   : > { %v840_v44 = vmul.f32 -2.5052108e-08, %v2186_v22  ;;  %v870_v7 = vmul.f32 %v862_v10, %v2154_v13  ;;  %v901_v27 = vmul.f32 %v893_v50, %v2132_v38  ;;  %v868_v29 = vmul.f32 %v860_v57, %v2168_v16 }
 0x196   : > { %v879_v42 = vadd.f32 0.008333334, %v871_v1  ;;  %v800_v39 = vfloor.f32 %v792_v5  ;;  %v849_v35 = vmul.f32 %v841_v17, %v2159_v14  ;;  %v798_v18 = vfloor.f32 %v790_v47 }
 0x197   : > { %v848_v6 = vadd.f32 2.7557319e-06, %v840_v44  ;;  %v878_v21 = vadd.f32 0.008333334, %v870_v7  ;;  %v899_v31 = vmul.f32 %v891_v3, %v2115_v24  ;;  %v876_v54 = vadd.f32 0.008333334, %v868_v29 }
 0x198   : > { %v887_v15 = vmul.f32 %v879_v42, %v2163_v9  ;;  %v788_v34 = vmul.f32 0.5, %v2117_v26  ;;  %v857_v60 = vadd.f32 -0.0001984127, %v849_v35  ;;  %v909_v51 = vadd.f32 1.0, %v901_v27 }
 0x199   : > { %v856_v46 = vmul.f32 %v848_v6, %v2186_v22  ;;  %v886_v52 = vmul.f32 %v878_v21, %v2154_v13  ;;  %v884_v28 = vmul.f32 %v876_v54, %v2168_v16  ;;  %v834_v41 = vmul.f32 -2.5052108e-08, %v2203_v48 }
 0x19a   : > { %v895_v36 = vadd.f32 -0.16666667, %v887_v15  ;;  %v823_v56 = vsub.f32 1.0, %v815_v23  ;;  %v808_v37 = vsub.f32 %v792_v5, %v800_v39  ;;  %v865_v53 = vmul.f32 %v857_v60, %v2159_v14 }
 0x19b   : > { %v864_v33 = vadd.f32 -0.0001984127, %v856_v46  ;;  %v894_v45 = vadd.f32 -0.16666667, %v886_v52  ;;  %v907_v62 = vadd.f32 1.0, %v899_v31  ;;  %v796_v10 = vfloor.f32 %v788_v34 }
 0x19c   : > { %v903_v38 = vmul.f32 %v895_v36, %v2163_v9  ;;  %v892_v63 = vadd.f32 -0.16666667, %v884_v28  ;;  %v842_v44 = vadd.f32 2.7557319e-06, %v834_v41  ;;  %v873_v9 = vadd.f32 0.008333334, %v865_v53 }
 0x19d   : > { %v872_v30 = vmul.f32 %v864_v33, %v2186_v22  ;;  %v902_v26 = vmul.f32 %v894_v45, %v2154_v13  ;;  %v917_v1 = vmul.f32 %v909_v51, %v2124_v43  ;;  %v786_v50 = vmul.f32 0.5, %v2111_v32 }
 0x19e   : > { %v911_v24 = vadd.f32 1.0, %v903_v38  ;;  %v850_v4 = vmul.f32 %v842_v44, %v2203_v48  ;;  %v806_v6 = vsub.f32 %v790_v47, %v798_v18  ;;  %v900_v7 = vmul.f32 %v892_v63, %v2168_v16 }
 0x19f   : > { %v880_v61 = vadd.f32 0.008333334, %v872_v30  ;;  %v881_v8 = vmul.f32 %v873_v9, %v2159_v14  ;;  %v816_v3 = vmul.f32 4.0, %v808_v37  ;;  %v915_v13 = vmul.f32 %v907_v62, %v2107_v12  ;;  %v2260_v37 = vpop.permute.xlu0 %954 }
 0x1a0   : > { %v919_v0 = vmul.f32 %v911_v24, %v2149_v55  ;;  %v858_v57 = vadd.f32 -0.0001984127, %v850_v4  ;;  %v910_v55 = vadd.f32 1.0, %v902_v26  ;;  %v804_v21 = vsub.f32 %v788_v34, %v796_v10 }
 0x1a1   : > { %v888_v2 = vmul.f32 %v880_v61, %v2186_v22  ;;  %v889_v43 = vadd.f32 -0.16666667, %v881_v8  ;;  %v925_v32 = vmul.f32 %v917_v1, %v821_v20  ;;  %v819_v17 = vsub.f32 1.0, %v2189_v59 }
 0x1a2   : > { %v927_v42 = vmul.f32 %v919_v0, %v823_v56  ;;  %v794_v23 = vfloor.f32 %v786_v50  ;;  %v866_v47 = vmul.f32 %v858_v57, %v2203_v48  ;;  %v814_v15 = vmul.f32 4.0, %v806_v6  ;;  %v930_v56 = vld [vmem:[%s2468_s5 + $0x8] sm:$0xff] }
 0x1a3   : > { %v896_v5 = vadd.f32 -0.16666667, %v888_v2  ;;  %v908_v27 = vadd.f32 1.0, %v900_v7  ;;  %v897_v29 = vmul.f32 %v889_v43, %v2159_v14  ;;  %v824_v39 = vsub.f32 1.0, %v816_v3  ;;  %v945_v2 = vpop.permute.xlu2 %944 }
 0x1a4   : > { %981 = vmatpush.msra.mxu2 %v927_v42  ;;  %v923_v12 = vmul.f32 %v915_v13, %v819_v17  ;;  %v874_v33 = vadd.f32 0.008333334, %v866_v47  ;;  %v918_v52 = vmul.f32 %v910_v55, %v2147_v58  ;;  %v812_v35 = vmul.f32 4.0, %v804_v21  ;;  %v929_v58 = vld [vmem:[%s2468_s5] sm:$0xff]  ;;  %v950_v42 = vpop.permute.xlu1 %949 }
 0x1a5   : > { %v904_v46 = vmul.f32 %v896_v5, %v2186_v22  ;;  %v905_v20 = vadd.f32 1.0, %v897_v29  ;;  %v817_v59 = vsub.f32 1.0, %v2178_v25  ;;  %v802_v36 = vsub.f32 %v786_v50, %v794_v23 }
 0x1a6   : > { %982 = vmatpush.msra.mxu2 %v925_v32  ;;  %v882_v18 = vmul.f32 %v874_v33, %v2203_v48  ;;  %v822_v54 = vsub.f32 1.0, %v814_v15  ;;  %v916_v14 = vmul.f32 %v908_v27, %v2145_v40  ;;  %vm1321_vm11 = vcmask 1040384  }
 0x1a7   : > { %v912_v16 = vadd.f32 1.0, %v904_v46  ;;  %v913_v30 = vmul.f32 %v905_v20, %v2128_v11  ;;  %v810_v38 = vmul.f32 4.0, %v802_v36  ;;  %v940_v61 = vpop.permute.xlu0 %939 }
 0x1a8   : > { %983 = vmatpush.msra.mxu2 %v923_v12  ;;  %v890_v45 = vadd.f32 -0.16666667, %v882_v18  ;;  %v926_v34 = vmul.f32 %v918_v52, %v822_v54 }
 0x1a9   : > { %v920_v22 = vmul.f32 %v912_v16, %v2176_v49  ;;  %v820_v49 = vsub.f32 1.0, %v812_v35  ;;  %v921_v60 = vmul.f32 %v913_v30, %v817_v59  ;;  %v818_v11 = vsub.f32 1.0, %v810_v38 }
 0x1aa   : > { %v898_v25 = vmul.f32 %v890_v45, %v2203_v48  ;;  %v931_v48 = vld [vmem:[%s2468_s5 + $0x10] sm:$0xff] }
 0x1ab   : > { %v928_v31 = vmul.f32 %v920_v22, %v824_v39  ;;  %v924_v51 = vmul.f32 %v916_v14, %v820_v49  ;;  %984 = vmatpush.msra.mxu2 %v921_v60 }
 0x1ac   : > { %v906_v28 = vadd.f32 1.0, %v898_v25  ;;  %1419 = vmatmul.msk.f32.vlgmr.msra.gmra.mxu2 %vm666_vm8, %v929_v58 }
 0x1ad   : > { %1010 = vmatpush.msra.mxu3 %v928_v31 }
 0x1ae   : > { %v914_v40 = vmul.f32 %v906_v28, %v2182_v19  ;;  %v932_v19 = vld [vmem:[%s2468_s5 + $0x18] sm:$0xff] }
 0x1af   : > { %1011 = vmatpush.msra.mxu3 %v926_v34 }
 0x1b0   : > { %v922_v41 = vmul.f32 %v914_v40, %v818_v11 }
 0x1b1   : > { %1012 = vmatpush.msra.mxu3 %v924_v51 }
 0x1b3   : > { %1013 = vmatpush.msra.mxu3 %v922_v41 }
 0x1b4   : > { %1423 = vmatmul.msk.f32.vlgmr.msra.gmra.mxu3 %vm666_vm8, %v929_v58  ;;  %1420 = vmatmul.msk.f32.gmra.mxu2 %vm666_vm8, %v930_v56 }
 0x1bc   : > { %1424 = vmatmul.msk.f32.gmra.mxu3 %vm666_vm8, %v930_v56  ;;  %1421 = vmatmul.msk.f32.gmra.mxu2 %vm666_vm8, %v931_v48 }
 0x1c4   : > { %1425 = vmatmul.msk.f32.gmra.mxu3 %vm666_vm8, %v931_v48  ;;  %1422 = vmatmul.msk.f32.gmra.mxu2 %vm666_vm8, %v932_v19 }
 0x1cc   : > { %1426 = vmatmul.msk.f32.gmra.mxu3 %vm666_vm8, %v932_v19 }
 0x22f   : > { %v986_v53 = vpop.f32.mrf.mxu2 }
 0x230   : > { %v2262_v24 = vadd.f32 %v986_v53, %v940_v61 }
 0x232   : > { %v1027_v62 = vmul.f32 0.31830987, %v2262_v24 }
 0x234   : > { %v1563_v63 = vcvt.f32.s32 %v1027_v62  ;;  %v1566_v3 = vand.u32 2147483648, %v1027_v62  ;;  %v1561_v21 = vand.u32 2147483647, %v1027_v62 }
 0x236   : > { %v1564_v0 = vcvt.s32.f32 %v1563_v63  ;;  %vm1562_vm2 = vcmp.lt.f32.partialorder %v1561_v21, 8388608.0 }
 0x237   : > { %v1015_v44 = vpop.f32.mrf.mxu3  ;;  %v989_v10 = vpop.f32.mrf.mxu2 }
 0x238   : > { %v2265_v26 = vadd.f32 %v1015_v44, %v940_v61  ;;  %v2267_v9 = vadd.f32 %v989_v10, %v945_v2  ;;  %v1565_v6 = vand.u32 2147483647, %v1564_v0 }
 0x23a   : > { %v1028_v1 = vmul.f32 0.31830987, %v2265_v26  ;;  %v1029_v50 = vmul.f32 0.31830987, %v2267_v9  ;;  %v1567_v23 = vor.u32 %v1566_v3, %v1565_v6 }
 0x23c   : > { %v1571_v4 = vcvt.f32.s32 %v1028_v1  ;;  %v1579_v5 = vcvt.f32.s32 %v1029_v50  ;;  %v1577_v57 = vand.u32 2147483647, %v1029_v50  ;;  %v1582_v32 = vand.u32 2147483648, %v1029_v50 }
 0x23d   : > { %v1569_v39 = vand.u32 2147483647, %v1028_v1  ;;  %v2279_v33 = vsel %vm1562_vm2, %v1567_v23, %v1027_v62  ;;  %v1574_v22 = vand.u32 2147483648, %v1028_v1 }
 0x23e   : > { %v1580_v7 = vcvt.s32.f32 %v1579_v5  ;;  %v1572_v13 = vcvt.s32.f32 %v1571_v4  ;;  %vm1578_vm1 = vcmp.lt.f32.partialorder %v1577_v57, 8388608.0  ;;  %v1043_v45 = vmul.f32 3.140625, %v2279_v33 }
 0x23f   : > { %v1018_v8 = vpop.f32.mrf.mxu3  ;;  %v992_v55 = vpop.f32.mrf.mxu2  ;;  %vm1570_vm3 = vcmp.lt.f32.partialorder %v1569_v39, 8388608.0  ;;  %v1059_v62 = vmul.f32 0.0009676536, %v2279_v33 }
 0x240   : > { %v2271_v46 = vadd.f32 %v1018_v8, %v945_v2  ;;  %v1581_v43 = vand.u32 2147483647, %v1580_v7  ;;  %v2273_v17 = vadd.f32 %v992_v55, %v950_v42  ;;  %v1573_v27 = vand.u32 2147483647, %v1572_v13 }
 0x241   : > { %v1051_v2 = vsub.f32 %v2262_v24, %v1043_v45 }
 0x242   : > { %v1030_v47 = vmul.f32 0.31830987, %v2271_v46  ;;  %v1583_v16 = vor.u32 %v1582_v32, %v1581_v43  ;;  %v1031_v15 = vmul.f32 0.31830987, %v2273_v17  ;;  %v1575_v18 = vor.u32 %v1574_v22, %v1573_v27 }
 0x243   : > { %v2310_v32 = vsub.f32 %v1051_v2, %v1059_v62 }
 0x244   : > { %v1587_v29 = vcvt.f32.s32 %v1030_v47  ;;  %v2277_v12 = vsel %vm1578_vm1, %v1583_v16, %v1029_v50  ;;  %v1585_v52 = vand.u32 2147483647, %v1030_v47  ;;  %v1595_v59 = vcvt.f32.s32 %v1031_v15 }
 0x245   : > { %v1045_v20 = vmul.f32 3.140625, %v2277_v12  ;;  %v1590_v54 = vand.u32 2147483648, %v1030_v47  ;;  %v1593_v58 = vand.u32 2147483647, %v1031_v15  ;;  %v1598_v28 = vand.u32 2147483648, %v1031_v15 }
 0x246   : > { %v1588_v35 = vcvt.s32.f32 %v1587_v29  ;;  %v1596_v34 = vcvt.s32.f32 %v1595_v59  ;;  %vm1586_vm4 = vcmp.lt.f32.partialorder %v1585_v52, 8388608.0  ;;  %v2291_v40 = vsel %vm1570_vm3, %v1575_v18, %v1028_v1 }
 0x247   : > { %v1021_v36 = vpop.f32.mrf.mxu3  ;;  %v995_v30 = vpop.f32.mrf.mxu2  ;;  %v1053_v25 = vsub.f32 %v2267_v9, %v1045_v20  ;;  %v1061_v48 = vmul.f32 0.0009676536, %v2277_v12  ;;  %vm1594_vm5 = vcmp.lt.f32.partialorder %v1593_v58, 8388608.0  ;;  %v1044_v10 = vmul.f32 3.140625, %v2291_v40 }
 0x248   : > { %v1589_v31 = vand.u32 2147483647, %v1588_v35  ;;  %v2282_v14 = vadd.f32 %v1021_v36, %v950_v42  ;;  %v2286_v49 = vadd.f32 %v995_v30, %v2260_v37  ;;  %v1597_v51 = vand.u32 2147483647, %v1596_v34 }
 0x249   : > { %v2300_v9 = vsub.f32 %v1053_v25, %v1061_v48  ;;  %v1052_v55 = vsub.f32 %v2265_v26, %v1044_v10  ;;  %v1060_v16 = vmul.f32 0.0009676536, %v2291_v40  ;;  %v1075_v29 = vmul.f32 0.5, %v2279_v33 }
 0x24a   : > { %v1591_v60 = vor.u32 %v1590_v54, %v1589_v31  ;;  %v1032_v38 = vmul.f32 0.31830987, %v2282_v14  ;;  %v1033_v11 = vmul.f32 0.31830987, %v2286_v49  ;;  %v1599_v61 = vor.u32 %v1598_v28, %v1597_v51 }
 0x24b   : > { %v2319_v27 = vmul.f32 %v2300_v9, %v2300_v9  ;;  %v2322_v39 = vsub.f32 %v1052_v55, %v1060_v16  ;;  %v1077_v18 = vmul.f32 0.5, %v2277_v12  ;;  %v2340_v58 = vmul.f32 %v2310_v32, %v2310_v32 }
 0x24c   : > { %v2293_v41 = vsel %vm1586_vm4, %v1591_v60, %v1030_v47  ;;  %v1603_v56 = vcvt.f32.s32 %v1032_v38  ;;  %v1601_v53 = vand.u32 2147483647, %v1032_v38  ;;  %v1611_v44 = vcvt.f32.s32 %v1033_v11 }
 0x24d   : > { %v1046_v19 = vmul.f32 3.140625, %v2293_v41  ;;  %v1600_v0 = vsel %vm1594_vm5, %v1599_v61, %v1031_v15  ;;  %v1606_v6 = vand.u32 2147483648, %v1032_v38  ;;  %v1062_v7 = vmul.f32 0.0009676536, %v2293_v41 }
 0x24e   : > { %v1604_v63 = vcvt.s32.f32 %v1603_v56  ;;  %v1047_v4 = vmul.f32 3.140625, %v1600_v0  ;;  %vm1602_vm6 = vcmp.lt.f32.partialorder %v1601_v53, 8388608.0  ;;  %v1612_v8 = vcvt.s32.f32 %v1611_v44 }
 0x24f   : > { %v1024_v1 = vpop.f32.mrf.mxu3  ;;  %v1054_v50 = vsub.f32 %v2271_v46, %v1046_v19  ;;  %v1609_v13 = vand.u32 2147483647, %v1033_v11  ;;  %v1614_v57 = vand.u32 2147483648, %v1033_v11  ;;  %v1063_v21 = vmul.f32 0.0009676536, %v1600_v0 }
 0x250   : > { %v1605_v5 = vand.u32 2147483647, %v1604_v63  ;;  %v2305_v42 = vadd.f32 %v1024_v1, %v2260_v37  ;;  %v1055_v24 = vsub.f32 %v2273_v17, %v1047_v4  ;;  %v1613_v43 = vand.u32 2147483647, %v1612_v8 }
 0x251   : > { %v2312_v23 = vsub.f32 %v1054_v50, %v1062_v7  ;;  %vm1610_vm7 = vcmp.lt.f32.partialorder %v1609_v13, 8388608.0  ;;  %v1125_v60 = vmul.f32 -2.5052108e-08, %v2319_v27  ;;  %v2344_v12 = vmul.f32 %v2322_v39, %v2322_v39 }
 0x252   : > { %v1607_v3 = vor.u32 %v1606_v6, %v1605_v5  ;;  %v1034_v46 = vmul.f32 0.31830987, %v2305_v42  ;;  %v2315_v37 = vsub.f32 %v1055_v24, %v1063_v21  ;;  %v1615_v17 = vor.u32 %v1614_v57, %v1613_v43 }
 0x253   : > { %v2327_v20 = vmul.f32 %v2312_v23, %v2312_v23  ;;  %v1085_v28 = vfloor.f32 %v1077_v18  ;;  %v2353_v56 = vmul.f32 0.5, %v2291_v40  ;;  %v1079_v63 = vmul.f32 0.5, %v1600_v0 }
 0x254   : > { %v1608_v47 = vsel %vm1602_vm6, %v1607_v3, %v1032_v38  ;;  %v1619_v26 = vcvt.f32.s32 %v1034_v46  ;;  %v1616_v35 = vsel %vm1610_vm7, %v1615_v17, %v1033_v11  ;;  %v2332_v31 = vmul.f32 %v2315_v37, %v2315_v37 }
 0x255   : > { %v1048_v15 = vmul.f32 3.140625, %v1608_v47  ;;  %v1064_v52 = vmul.f32 0.0009676536, %v1608_v47  ;;  %v1049_v59 = vmul.f32 3.140625, %v1616_v35  ;;  %v1617_v33 = vand.u32 2147483647, %v1034_v46 }
 0x256   : > { %v1620_v36 = vcvt.s32.f32 %v1619_v26  ;;  %v1622_v30 = vand.u32 2147483648, %v1034_v46  ;;  %v1065_v45 = vmul.f32 0.0009676536, %v1616_v35  ;;  %v1083_v38 = vfloor.f32 %v1075_v29 }
 0x257   : > { %v1056_v22 = vsub.f32 %v2282_v14, %v1048_v15  ;;  %v1057_v14 = vsub.f32 %v2286_v49, %v1049_v59  ;;  %vm1618_vm9 = vcmp.lt.f32.partialorder %v1617_v33, 8388608.0  ;;  %v1133_v11 = vadd.f32 2.7557319e-06, %v1125_v60 }
 0x258   : > { %v1621_v34 = vand.u32 2147483647, %v1620_v36  ;;  %v1127_v61 = vmul.f32 -2.5052108e-08, %v2332_v31  ;;  %v1126_v53 = vmul.f32 -2.5052108e-08, %v2327_v20  ;;  %v2364_v2 = vsub.f32 %v1075_v29, %v1083_v38 }
 0x259   : > { %v2334_v54 = vsub.f32 %v1056_v22, %v1064_v52  ;;  %v2346_v25 = vsub.f32 %v1057_v14, %v1065_v45  ;;  %v2362_v44 = vmul.f32 0.5, %v2293_v41  ;;  %v1080_v1 = vmul.f32 0.5, %v1608_v47 }
 0x25a   : > { %v1623_v51 = vor.u32 %v1622_v30, %v1621_v34  ;;  %v1135_v40 = vadd.f32 2.7557319e-06, %v1127_v61  ;;  %v1093_v50 = vsub.f32 %v1077_v18, %v1085_v28  ;;  %v1141_v7 = vmul.f32 %v1133_v11, %v2319_v27 }
 0x25b   : > { %v2350_v49 = vmul.f32 %v2334_v54, %v2334_v54  ;;  %v2357_v48 = vmul.f32 %v2346_v25, %v2346_v25  ;;  %v1081_v8 = vmul.f32 0.5, %v1616_v35  ;;  %v1134_v41 = vadd.f32 2.7557319e-06, %v1126_v53 }
 0x25c   : > { %v1624_v19 = vsel %vm1618_vm9, %v1623_v51, %v1034_v46  ;;  %v1143_v0 = vmul.f32 %v1135_v40, %v2332_v31  ;;  %v1087_v13 = vfloor.f32 %v1079_v63  ;;  %v1149_v55 = vadd.f32 -0.0001984127, %v1141_v7 }
 0x25d   : > { %v1050_v62 = vmul.f32 3.140625, %v1624_v19  ;;  %v1129_v10 = vmul.f32 -2.5052108e-08, %v2357_v48  ;;  %v1066_v5 = vmul.f32 0.0009676536, %v1624_v19  ;;  %v1142_v46 = vmul.f32 %v1134_v41, %v2327_v20 }
 0x25e   : > { %v1128_v6 = vmul.f32 -2.5052108e-08, %v2350_v49  ;;  %v1151_v43 = vadd.f32 -0.0001984127, %v1143_v0  ;;  %v1088_v16 = vfloor.f32 %v1080_v1  ;;  %v1157_v17 = vmul.f32 %v1149_v55, %v2319_v27 }
 0x25f   : > { %v1058_v4 = vsub.f32 %v2305_v42, %v1050_v62  ;;  %v1137_v24 = vadd.f32 2.7557319e-06, %v1129_v10  ;;  %v1086_v42 = vfloor.f32 %v2362_v44  ;;  %v2383_v22 = vmul.f32 4.0, %v1093_v50 }
 0x260   : > { %v1136_v57 = vadd.f32 2.7557319e-06, %v1128_v6  ;;  %v1159_v29 = vmul.f32 %v1151_v43, %v2332_v31  ;;  %v1150_v52 = vadd.f32 -0.0001984127, %v1142_v46  ;;  %v1089_v35 = vfloor.f32 %v1081_v8 }
 0x261   : > { %v2371_v3 = vsub.f32 %v1058_v4, %v1066_v5  ;;  %v1145_v21 = vmul.f32 %v1137_v24, %v2357_v48  ;;  %v1095_v36 = vsub.f32 %v1079_v63, %v1087_v13  ;;  %v1165_v14 = vadd.f32 0.008333334, %v1157_v17 }
 0x262   : > { %v1144_v15 = vmul.f32 %v1136_v57, %v2350_v49  ;;  %v1167_v30 = vadd.f32 0.008333334, %v1159_v29  ;;  %v1158_v45 = vmul.f32 %v1150_v52, %v2327_v20  ;;  %v1082_v34 = vmul.f32 0.5, %v1624_v19 }
 0x263   : > { %v2378_v47 = vmul.f32 %v2371_v3, %v2371_v3  ;;  %v1153_v26 = vadd.f32 -0.0001984127, %v1145_v21  ;;  %v1123_v51 = vmul.f32 -2.5052108e-08, %v2340_v58  ;;  %v1173_v61 = vmul.f32 %v1165_v14, %v2319_v27 }
 0x264   : > { %v1152_v18 = vadd.f32 -0.0001984127, %v1144_v15  ;;  %v1175_v11 = vmul.f32 %v1167_v30, %v2332_v31  ;;  %v1166_v53 = vadd.f32 0.008333334, %v1158_v45  ;;  %v1096_v63 = vsub.f32 %v1080_v1, %v1088_v16 }
 0x265   : > { %v1130_v59 = vmul.f32 -2.5052108e-08, %v2378_v47  ;;  %v1161_v33 = vmul.f32 %v1153_v26, %v2357_v48  ;;  %v1131_v40 = vadd.f32 2.7557319e-06, %v1123_v51  ;;  %v1097_v50 = vsub.f32 %v1081_v8, %v1089_v35 }
 0x266   : > { %v1160_v38 = vmul.f32 %v1152_v18, %v2350_v49  ;;  %v1183_v19 = vadd.f32 -0.16666667, %v1175_v11  ;;  %v1181_v5 = vadd.f32 -0.16666667, %v1173_v61  ;;  %v1174_v24 = vmul.f32 %v1166_v53, %v2327_v20 }
 0x267   : > { %v1138_v60 = vadd.f32 2.7557319e-06, %v1130_v59  ;;  %v1169_v28 = vadd.f32 0.008333334, %v1161_v33  ;;  %v1139_v0 = vmul.f32 %v1131_v40, %v2340_v58  ;;  %v1090_v13 = vfloor.f32 %v1082_v34 }
 0x268   : > { %v1168_v10 = vadd.f32 0.008333334, %v1160_v38  ;;  %v1191_v57 = vmul.f32 %v1183_v19, %v2332_v31  ;;  %v1189_v1 = vmul.f32 %v1181_v5, %v2319_v27  ;;  %v1124_v43 = vmul.f32 -2.5052108e-08, %v2344_v12 }
 0x269   : > { %v1146_v62 = vmul.f32 %v1138_v60, %v2378_v47  ;;  %v1177_v4 = vmul.f32 %v1169_v28, %v2357_v48  ;;  %v1147_v21 = vadd.f32 -0.0001984127, %v1139_v0  ;;  %v1105_v46 = vmul.f32 4.0, %v1097_v50 }
 0x26a   : > { %v1176_v7 = vmul.f32 %v1168_v10, %v2350_v49  ;;  %v1103_v15 = vmul.f32 4.0, %v1095_v36  ;;  %v1199_v17 = vadd.f32 1.0, %v1191_v57  ;;  %v1182_v29 = vadd.f32 -0.16666667, %v1174_v24 }
 0x26b   : > { %v1154_v6 = vadd.f32 -0.0001984127, %v1146_v62  ;;  %v1185_v41 = vadd.f32 -0.16666667, %v1177_v4  ;;  %v1155_v52 = vmul.f32 %v1147_v21, %v2340_v58  ;;  %v1132_v35 = vadd.f32 2.7557319e-06, %v1124_v43 }
 0x26c   : > { %v1184_v8 = vadd.f32 -0.16666667, %v1176_v7  ;;  %v1098_v31 = vsub.f32 %v1082_v34, %v1090_v13  ;;  %v1197_v18 = vadd.f32 1.0, %v1189_v1  ;;  %v1094_v27 = vsub.f32 %v2362_v44, %v1086_v42 }
 0x26d   : > { %v1162_v55 = vmul.f32 %v1154_v6, %v2378_v47  ;;  %v1193_v16 = vmul.f32 %v1185_v41, %v2357_v48  ;;  %v1163_v14 = vadd.f32 0.008333334, %v1155_v52  ;;  %v1140_v45 = vmul.f32 %v1132_v35, %v2344_v12 }
 0x26e   : > { %v1192_v30 = vmul.f32 %v1184_v8, %v2350_v49  ;;  %v1113_v48 = vsub.f32 1.0, %v1105_v46  ;;  %v1111_v60 = vsub.f32 1.0, %v1103_v15  ;;  %v1207_v38 = vmul.f32 %v1199_v17, %v2315_v37  ;;  %v1224_v17 = vpop.permute.xlu1 %1223 }
 0x26f   : > { %v1170_v26 = vadd.f32 0.008333334, %v1162_v55  ;;  %v1201_v59 = vadd.f32 1.0, %v1193_v16  ;;  %v1190_v28 = vmul.f32 %v1182_v29, %v2327_v20  ;;  %v1171_v34 = vmul.f32 %v1163_v14, %v2340_v58 }
 0x270   : > { %v1148_v11 = vadd.f32 -0.0001984127, %v1140_v45  ;;  %v1106_v42 = vmul.f32 4.0, %v1098_v31  ;;  %v1205_v61 = vmul.f32 %v1197_v18, %v2300_v9  ;;  %v1084_v49 = vfloor.f32 %v2353_v56 }
 0x271   : > { %v1178_v33 = vmul.f32 %v1170_v26, %v2378_v47  ;;  %v1209_v36 = vmul.f32 %v1201_v59, %v2346_v25  ;;  %v1200_v62 = vadd.f32 1.0, %v1192_v30  ;;  %v1179_v10 = vadd.f32 -0.16666667, %v1171_v34 }
 0x272   : > { %v1156_v25 = vmul.f32 %v1148_v11, %v2344_v12  ;;  %v1215_v37 = vmul.f32 %v1207_v38, %v1111_v60  ;;  %v1104_v40 = vmul.f32 4.0, %v1096_v63  ;;  %v1109_v20 = vsub.f32 1.0, %v2383_v22 }
 0x273   : > { %v1186_v51 = vadd.f32 -0.16666667, %v1178_v33  ;;  %v1217_v44 = vmul.f32 %v1209_v36, %v1113_v48  ;;  %v1099_v50 = vmul.f32 4.0, %v2364_v2  ;;  %v1198_v19 = vadd.f32 1.0, %v1190_v28 }
 0x274   : > { %v1187_v5 = vmul.f32 %v1179_v10, %v2340_v58  ;;  %v1164_v9 = vadd.f32 0.008333334, %v1156_v25  ;;  %v1114_v6 = vsub.f32 1.0, %v1106_v42  ;;  %v1213_v7 = vmul.f32 %v1205_v61, %v1109_v20 }
 0x275   : > { %v1194_v53 = vmul.f32 %v1186_v51, %v2378_v47  ;;  %1242 = vmatpush.msrb.mxu0 %v1217_v44  ;;  %v1102_v47 = vmul.f32 4.0, %v1094_v27  ;;  %v1092_v24 = vsub.f32 %v2353_v56, %v1084_v49  ;;  %v1208_v41 = vmul.f32 %v1200_v62, %v2334_v54  ;;  %v1219_v54 = vld [vmem:[%s2470_s7] sm:$0x1] }
 0x276   : > { %v1195_v63 = vadd.f32 1.0, %v1187_v5  ;;  %v1172_v22 = vmul.f32 %v1164_v9, %v2344_v12  ;;  %v1112_v13 = vsub.f32 1.0, %v1104_v40  ;;  %v1107_v2 = vsub.f32 1.0, %v1099_v50 }
 0x277   : > { %v1202_v4 = vadd.f32 1.0, %v1194_v53  ;;  %1243 = vmatpush.msrb.mxu0 %v1215_v37  ;;  %v1206_v58 = vmul.f32 %v1198_v19, %v2312_v23  ;;  %v1110_v8 = vsub.f32 1.0, %v1102_v47  ;;  %v1100_v43 = vmul.f32 4.0, %v1092_v24 }
 0x278   : > { %v1203_v1 = vmul.f32 %v1195_v63, %v2310_v32  ;;  %v1180_v55 = vadd.f32 -0.16666667, %v1172_v22  ;;  %v1216_v21 = vmul.f32 %v1208_v41, %v1112_v13 }
 0x279   : > { %v1210_v0 = vmul.f32 %v1202_v4, %v2371_v3  ;;  %1244 = vmatpush.msrb.mxu0 %v1213_v7  ;;  %v1214_v46 = vmul.f32 %v1206_v58, %v1110_v8  ;;  %v1108_v32 = vsub.f32 1.0, %v1100_v43 }
 0x27a   : > { %v1211_v56 = vmul.f32 %v1203_v1, %v1107_v2  ;;  %v1188_v3 = vmul.f32 %v1180_v55, %v2344_v12  ;;  %v1226_v12 = vperm.slane %v1224_v17, 0 }
 0x27b   : > { %v1218_v57 = vmul.f32 %v1210_v0, %v1114_v6 }
 0x27c   : > { %1245 = vmatpush.msrb.mxu0 %v1211_v56  ;;  %v1196_v16 = vadd.f32 1.0, %v1188_v3 }
 0x27d   : > { %1262 = vmatpush.msrb.mxu1 %v1218_v57  ;;  %1427 = vmatmul.msk.f32.vlgmr.msrb.gmra.mxu0 %vm666_vm8, %v1219_v54 }
 0x27e   : > { %v1204_v23 = vmul.f32 %v1196_v16, %v2322_v39 }
 0x27f   : > { %1263 = vmatpush.msrb.mxu1 %v1216_v21 }
 0x280   : > { %v1212_v15 = vmul.f32 %v1204_v23, %v1108_v32 }
 0x281   : > { %1264 = vmatpush.msrb.mxu1 %v1214_v46 }
 0x283   : > { %1265 = vmatpush.msrb.mxu1 %v1212_v15  ;;  %v1324_v15 = vlaneseq }
 0x284   : > { %1428 = vmatmul.msk.f32.vlgmr.msrb.gmra.mxu1 %vm666_vm8, %v1219_v54 }
 0x285   : > { %vm1326_vm12 = vcmp.lt.s32.totalorder %v1324_v15, 256 }
 0x2fa   : > { %v1247_v26 = vpop.f32.mrf.mxu0 }
 0x2fb   : > { %v1248_v29 = vadd.f32 %v1247_v26, %v1226_v12 }
 0x2fd   : > { %v1270_v52 = vmul.f32 0.31830987, %v1248_v29 }
 0x2ff   : > { %v1627_v35 = vcvt.f32.s32 %v1270_v52  ;;  %v1625_v27 = vand.u32 2147483647, %v1270_v52  ;;  %v1630_v30 = vand.u32 2147483648, %v1270_v52 }
 0x301   : > { %v1267_v59 = vpop.f32.mrf.mxu1  ;;  %v1628_v31 = vcvt.s32.f32 %v1627_v35  ;;  %vm1626_vm10 = vcmp.lt.f32.partialorder %v1625_v27, 8388608.0 }
 0x302   : > { %v1268_v18 = vadd.f32 %v1267_v59, %v1226_v12 }
 0x303   : > { %v1629_v33 = vand.u32 2147483647, %v1628_v31 }
 0x304   : > { %v1271_v14 = vmul.f32 0.31830987, %v1268_v18 }
 0x305   : > { %v1631_v45 = vor.u32 %v1630_v30, %v1629_v33 }
 0x306   : > { %v1635_v48 = vcvt.f32.s32 %v1271_v14  ;;  %v1633_v38 = vand.u32 2147483647, %v1271_v14  ;;  %v1638_v28 = vand.u32 2147483648, %v1271_v14 }
 0x307   : > { %v1632_v39 = vsel %vm1626_vm10, %v1631_v45, %v1270_v52 }
 0x308   : > { %v1636_v36 = vcvt.s32.f32 %v1635_v48  ;;  %v1274_v60 = vmul.f32 3.140625, %v1632_v39  ;;  %v1278_v11 = vmul.f32 0.0009676536, %v1632_v39  ;;  %vm1634_vm8 = vcmp.lt.f32.partialorder %v1633_v38, 8388608.0 }
 0x309   : > { %v1282_v24 = vmul.f32 0.5, %v1632_v39 }
 0x30a   : > { %v1637_v51 = vand.u32 2147483647, %v1636_v36  ;;  %v1276_v34 = vsub.f32 %v1248_v29, %v1274_v60 }
 0x30b   : > { %v1284_v2 = vfloor.f32 %v1282_v24 }
 0x30c   : > { %v1639_v44 = vor.u32 %v1638_v28, %v1637_v51  ;;  %v1280_v42 = vsub.f32 %v1276_v34, %v1278_v11 }
 0x30d   : > { %v1286_v8 = vsub.f32 %v1282_v24, %v1284_v2 }
 0x30e   : > { %v1640_v61 = vsel %vm1634_vm8, %v1639_v44, %v1271_v14  ;;  %v1292_v49 = vmul.f32 %v1280_v42, %v1280_v42 }
 0x30f   : > { %v1275_v53 = vmul.f32 3.140625, %v1640_v61  ;;  %v1279_v25 = vmul.f32 0.0009676536, %v1640_v61  ;;  %v1283_v7 = vmul.f32 0.5, %v1640_v61  ;;  %v1288_v54 = vmul.f32 4.0, %v1286_v8 }
 0x310   : > { %v1294_v62 = vmul.f32 -2.5052108e-08, %v1292_v49 }
 0x311   : > { %v1277_v10 = vsub.f32 %v1268_v18, %v1275_v53  ;;  %v1285_v22 = vfloor.f32 %v1283_v7  ;;  %v1290_v17 = vsub.f32 1.0, %v1288_v54 }
 0x312   : > { %v1296_v37 = vadd.f32 2.7557319e-06, %v1294_v62 }
 0x313   : > { %v1281_v40 = vsub.f32 %v1277_v10, %v1279_v25  ;;  %v1287_v1 = vsub.f32 %v1283_v7, %v1285_v22 }
 0x314   : > { %v1298_v20 = vmul.f32 %v1296_v37, %v1292_v49 }
 0x315   : > { %v1293_v50 = vmul.f32 %v1281_v40, %v1281_v40  ;;  %v1289_v43 = vmul.f32 4.0, %v1287_v1 }
 0x316   : > { %v1300_v4 = vadd.f32 -0.0001984127, %v1298_v20 }
 0x317   : > { %v1295_v19 = vmul.f32 -2.5052108e-08, %v1293_v50  ;;  %v1291_v32 = vsub.f32 1.0, %v1289_v43 }
 0x318   : > { %v1302_v5 = vmul.f32 %v1300_v4, %v1292_v49 }
 0x319   : > { %v1297_v9 = vadd.f32 2.7557319e-06, %v1295_v19 }
 0x31a   : > { %v1304_v6 = vadd.f32 0.008333334, %v1302_v5 }
 0x31b   : > { %v1299_v47 = vmul.f32 %v1297_v9, %v1293_v50 }
 0x31c   : > { %v1306_v0 = vmul.f32 %v1304_v6, %v1292_v49 }
 0x31d   : > { %v1301_v41 = vadd.f32 -0.0001984127, %v1299_v47 }
 0x31e   : > { %v1308_v63 = vadd.f32 -0.16666667, %v1306_v0 }
 0x31f   : > { %v1303_v13 = vmul.f32 %v1301_v41, %v1293_v50 }
 0x320   : > { %v1310_v58 = vmul.f32 %v1308_v63, %v1292_v49 }
 0x321   : > { %v1305_v57 = vadd.f32 0.008333334, %v1303_v13 }
 0x322   : > { %v1312_v56 = vadd.f32 1.0, %v1310_v58 }
 0x323   : > { %v1307_v55 = vmul.f32 %v1305_v57, %v1293_v50 }
 0x324   : > { %v1314_v16 = vmul.f32 %v1312_v56, %v1280_v42 }
 0x325   : > { %v1309_v21 = vadd.f32 -0.16666667, %v1307_v55 }
 0x326   : > { %v1316_v26 = vmul.f32 %v1314_v16, %v1290_v17 }
 0x327   : > { %v1311_v3 = vmul.f32 %v1309_v21, %v1293_v50 }
 0x329   : > { %v1313_v46 = vadd.f32 1.0, %v1311_v3 }
 0x32b   : > { %v1315_v23 = vmul.f32 %v1313_v46, %v1281_v40 }
 0x32d   : > { %v1317_v12 = vmul.f32 %v1315_v23, %v1291_v32 }
 0x32f   : > { %v1320_v29 = vrot.slane %v1317_v12, 7 }
 0x331   : > { %v1322_v52 = vsel %vm1321_vm11, %v1316_v26, %v1320_v29 }
 0x332   : > { %1328 = vst.msk [vmem:[%s328_s10] sm:$0x3] %vm1326_vm12, %v1322_v52 }
 0x333   : > { %1718 = shalt.err (!%p1715_p3)
}
 0x334   : > { %1641 = dma.vmem_to_hbm [thread:$0]  (%p1847_p5), %s1343_s15, 32, %s1345_s17, %s1330_s8  }
 0x335 PF: > { %p1647_p4 = scmp.ge.s32.totalorder %s1753_s14, 2  ;;  %s1356_s25 = sand.u32 1, %s1741_s11  }
 0x336   : > { %s1357_s29 = scalar_lea.sflag [#allocation4], %s1356_s25 }
 0x337   : > { %p1644_p7 = pnand %p1647_p4, %p1851_p6 }
 0x339   : > { %p1645_p8 = pneg %p1644_p7 }
 0x33b   : > { %1736 = dma.done.wait (%p1645_p8), %s1357_s29, 32  }
 0x33c   : > { %1738 = vsyncadd (%p1645_p8), %s1357_s29, 4294967264  ;;  %p21_p9 = scmp.ge.s32.totalorder %s1833_s16, 6   ;;  %s2475_s11 = smov %s1745_s12 }
 0x33d   : > { %s2476_s12 = smov %s1749_s13  ;;  %s2477_s13 = smov %s1845_s19 }
 0x33e   : > { %s2478_s14 = smov %s1833_s16  ;;  %23 = sbr.rel (!%p21_p9) target bundleno = 6 (0x6), region = 91 }
 0x343   :  { %1363 = vsyncpa [#allocation4], 1 }
 0x344   :  { %1365 = vsyncpa [#allocation4 + $0x1], 1 }

</bundles_post_ra>
